<compile_context>
chip_gen: v7x
topology: tpu7x:2x2x1
jax: 0.10.0
libtpu: 0.0.40
codegen_flags: <defaults>
</compile_context>

<pallas_src>
import functools

import jax
import jax.numpy as jnp
import numpy as np
from jax.experimental import pallas as pl
from jax.experimental.pallas import tpu as pltpu


def indexup_kernel(planes_ref, w1_ref, bias_ref, w2_ref, s0_ref, s1_ref, d_ref,
                   fd_ref, out_ref):
    """One (batch, row-tile) grid step.

    planes_ref: (1, 1, 4, nr+1, C, Wo+1)  halo'd parity planes of padded feature_en
    w1_ref:     (2C, 16C)                 4x4/s2 conv as matmul, eval-BN scale folded
    bias_ref:   (2C, 1)                   folded eval-BN bias (f32)
    w2_ref:     (4, 2C)                   1x1 conv as matmul
    s0_ref/s1_ref: (Wo, 2Wo)              0/1 even/odd column-interleave matrices
    d_ref:      (2nr, nr)                 0/1 row-duplication (nearest x2) matrix
    fd_ref:     (1, C_de, 1, nr, Wo)      feature_de rows of this tile
    out_ref:    (1, C_de, 1, 2nr, 2Wo)    final NCHW output rows (f32, lane-dense)
    """
    C = planes_ref.shape[4]
    Wo = planes_ref.shape[5] - 1
    nr = fd_ref.shape[3]
    C_de = fd_ref.shape[1]

    w1 = w1_ref[...]
    bias = bias_ref[...]
    w2 = w2_ref[...]
    s0 = s0_ref[...]
    s1 = s1_ref[...]
    dmat = d_ref[...]
    up = s0 + s1                       # (Wo, 2Wo) nearest x2 column upsample (0/1)

    # ---- Phase 1: index mask for every output row-pair of this tile. -----------
    even_rows, odd_rows = [], []
    for i in range(nr):                # static unroll over the low-res rows
        # 16 taps of the 4x4/s2 conv, rebuilt from the parity planes:
        #   tap(kh, kw)[c, j] = x_pad[c, 2*(row0+i)+kh, 2*j+kw]
        taps = [planes_ref[0, 0, (kh % 2) * 2 + (kw % 2), i + kh // 2, :,
                           pl.ds(kw // 2, Wo)]
                for kh in range(4) for kw in range(4)]
        a = jnp.concatenate(taps, axis=0)                           # (16C, Wo)
        h = jnp.dot(w1, a, preferred_element_type=jnp.float32)      # (2C, Wo)
        h = jnp.clip(h + bias, 0.0, 6.0)                            # folded BN + ReLU6
        logits = jnp.dot(w2, h.astype(w2.dtype),
                         preferred_element_type=jnp.float32)        # (4, Wo)
        # sigmoid inside HolisticIndexBlock, then the second sigmoid in IndexUp.
        m = jax.nn.sigmoid(jax.nn.sigmoid(logits)).astype(s0.dtype)  # (4, Wo)
        # sub-pixel p = 2r + s; row 2i+r gets channels (2r, 2r+1) for s = 0, 1.
        even_rows += [m[0:1, :], m[2:3, :]]
        odd_rows += [m[1:2, :], m[3:4, :]]

    e = jnp.concatenate(even_rows, axis=0)                          # (2nr, Wo)
    o = jnp.concatenate(odd_rows, axis=0)                           # (2nr, Wo)
    # Column interleave via exact 0/1 selection dots: mask_hr[2i+r, 2j+s].
    mask_hr = (jnp.dot(e, s0, preferred_element_type=jnp.float32)
               + jnp.dot(o, s1, preferred_element_type=jnp.float32))  # (2nr, 2Wo) f32

    # ---- Phase 2: nearest x2 upsample of feature_de, masked, dense stores. -----
    for c in range(C_de):
        fd_c = fd_ref[0, c, 0, :, :]                                # (nr, Wo)
        t = jnp.dot(fd_c, up, preferred_element_type=jnp.float32)   # (nr, 2Wo)
        fd_up = jnp.dot(dmat, t.astype(up.dtype),
                        preferred_element_type=jnp.float32)         # (2nr, 2Wo)
        out_ref[0, c, 0, :, :] = (mask_hr * fd_up).astype(out_ref.dtype)


def _ceil_to(x, m):
    return -(-x // m) * m


def _vmem_block_bytes(nr, C, C_de, Wo, in_bytes):
    """Rough double-buffered working-set estimate for a (1, row-tile) grid step."""
    sub = max(8, 32 // in_bytes)                      # 8 sublanes (f32) / 16 (bf16)
    planes = 4 * (nr + 1) * _ceil_to(C, sub) * _ceil_to(Wo + 1, 128) * in_bytes
    fd = C_de * _ceil_to(nr, sub) * _ceil_to(Wo, 128) * in_bytes
    out = C_de * _ceil_to(2 * nr, 8) * _ceil_to(2 * Wo, 128) * 4
    w1 = _ceil_to(2 * C, sub) * _ceil_to(16 * C, 128) * in_bytes
    smat = 3 * _ceil_to(max(Wo, 2 * nr), sub) * _ceil_to(2 * Wo, 128) * in_bytes
    return 2 * (planes + fd + out) + 2 * (w1 + smat) + (2 << 20)


def _pick_row_tile(Ho, B, C, C_de, Wo, in_bytes, budget):
    """Largest row tile (divisor of Ho) under the VMEM budget; prefer multiples of 8
    and at least 4 total grid steps (v7x has 2 TensorCores + needs pipeline depth)."""
    divs = {d for d in range(1, min(Ho, 32) + 1) if Ho % d == 0}
    if Ho <= 64:
        divs.add(Ho)
    divs = sorted(divs, key=lambda d: (d % 8 == 0, d), reverse=True)
    fit = [d for d in divs if _vmem_block_bytes(d, C, C_de, Wo, in_bytes) <= budget]
    if not fit:
        fit = [min(divs)]
    best = fit[0]
    if B * (Ho // best) < 4:
        for d in fit:
            if B * (Ho // d) >= 4:
                best = d
                break
    return best


def indexup_forward(feature_en, feature_de, params, *, compute_dtype=jnp.bfloat16,
                    vmem_budget_bytes=26 << 20):
    """Full IndexUp forward (NCHW in / NCHW out). bf16 loads, f32 accumulate/output."""
    w1_oihw, gamma, beta, mean, var, w2_oihw = params
    B, C, H, W = feature_en.shape
    Bd, C_de, Ho, Wo = feature_de.shape
    assert Bd == B and H % 2 == 0 and W % 2 == 0 and Ho == H // 2 and Wo == W // 2

    in_bytes = jnp.dtype(compute_dtype).itemsize
    nr = _pick_row_tile(Ho, B, C, C_de, Wo, in_bytes, vmem_budget_bytes)
    R = Ho // nr

    # ---- glue: halo'd parity-plane row tiles (~1x feature_en bytes, vs 4x im2col).
    x_pad = jnp.pad(feature_en.astype(compute_dtype),
                    ((0, 0), (0, 0), (1, 1), (1, 1)))                 # (B, C, 2Ho+2, 2Wo+2)
    xp = x_pad.reshape(B, C, Ho + 1, 2, Wo + 1, 2)
    planes = jnp.transpose(xp, (0, 3, 5, 1, 2, 4)).reshape(B, 4, C, Ho + 1, Wo + 1)
    main = planes[:, :, :, :Ho, :].reshape(B, 4, C, R, nr, Wo + 1)
    halo = planes[:, :, :, nr:Ho + 1:nr, :][:, :, :, :, None, :]      # (B, 4, C, R, 1, Wo+1)
    pt = jnp.concatenate([main, halo], axis=4)                        # (B, 4, C, R, nr+1, Wo+1)
    planes_tiled = jnp.transpose(pt, (0, 3, 1, 4, 2, 5))              # (B, R, 4, nr+1, C, Wo+1)

    # Fold eval-BatchNorm scale into the conv weight; only the bias stays in-kernel.
    inv_std = gamma / jnp.sqrt(var + 1e-5)
    w1_t = jnp.transpose(w1_oihw, (0, 2, 3, 1)).reshape(2 * C, 16 * C)
    w1_t = (w1_t * inv_std[:, None]).astype(compute_dtype)            # (2C, 16C)
    bias = (beta - mean * inv_std).reshape(2 * C, 1).astype(jnp.float32)
    w2_t = w2_oihw.reshape(4, 2 * C).astype(compute_dtype)            # single-pass MXU dot

    # Exact 0/1 interleave / nearest-upsample operators (tiny, VMEM-resident).
    jcol = np.arange(Wo)
    s0 = np.zeros((Wo, 2 * Wo), np.float32)
    s0[jcol, 2 * jcol] = 1.0
    s1 = np.zeros((Wo, 2 * Wo), np.float32)
    s1[jcol, 2 * jcol + 1] = 1.0
    irow = np.arange(nr)
    dmat = np.zeros((2 * nr, nr), np.float32)
    dmat[2 * irow, irow] = 1.0
    dmat[2 * irow + 1, irow] = 1.0
    s0 = jnp.asarray(s0, compute_dtype)
    s1 = jnp.asarray(s1, compute_dtype)
    dmat = jnp.asarray(dmat, compute_dtype)

    fd_t = feature_de.reshape(B, C_de, R, nr, Wo).astype(compute_dtype)   # free split

    est = _vmem_block_bytes(nr, C, C_de, Wo, in_bytes)
    vmem_limit = int(min(max(2 * est, 48 << 20), 100 << 20))

    grid = (B, R)
    out = pl.pallas_call(
        indexup_kernel,
        out_shape=jax.ShapeDtypeStruct((B, C_de, R, 2 * nr, 2 * Wo), jnp.float32),
        grid_spec=pltpu.PrefetchScalarGridSpec(
            num_scalar_prefetch=0,
            grid=grid,
            in_specs=[
                pl.BlockSpec((1, 1, 4, nr + 1, C, Wo + 1),
                             lambda b, t: (b, t, 0, 0, 0, 0)),
                pl.BlockSpec((2 * C, 16 * C), lambda b, t: (0, 0)),
                pl.BlockSpec((2 * C, 1), lambda b, t: (0, 0)),
                pl.BlockSpec((4, 2 * C), lambda b, t: (0, 0)),
                pl.BlockSpec((Wo, 2 * Wo), lambda b, t: (0, 0)),
                pl.BlockSpec((Wo, 2 * Wo), lambda b, t: (0, 0)),
                pl.BlockSpec((2 * nr, nr), lambda b, t: (0, 0)),
                pl.BlockSpec((1, C_de, 1, nr, Wo), lambda b, t: (b, 0, t, 0, 0)),
            ],
            out_specs=pl.BlockSpec((1, C_de, 1, 2 * nr, 2 * Wo),
                                   lambda b, t: (b, 0, t, 0, 0)),
        ),
        compiler_params=pltpu.CompilerParams(
            dimension_semantics=("parallel", "parallel"),
            vmem_limit_bytes=vmem_limit),
    )(planes_tiled, w1_t, bias, w2_t, s0, s1, dmat, fd_t)

    # (B, C_de, R, 2nr, 2Wo) -> (B, C_de, 2Ho, 2Wo): contiguous merge, free (no transpose).
    return out.reshape(B, C_de, 2 * Ho, 2 * Wo)


def reference(feature_en, feature_de, params):
    """Pure-JAX f32 reference mirroring the PyTorch forward."""
    w1, gamma, beta, mean, var, w2 = params
    dn = ("NCHW", "OIHW", "NCHW")
    h = jax.lax.conv_general_dilated(
        feature_en, w1, (2, 2), ((1, 1), (1, 1)), dimension_numbers=dn,
        precision=jax.lax.Precision.HIGHEST)
    scale = gamma / jnp.sqrt(var + 1e-5)
    bias = beta - mean * scale
    h = h * scale[None, :, None, None] + bias[None, :, None, None]
    h = jnp.clip(h, 0.0, 6.0)
    logits = jax.lax.conv_general_dilated(
        h, w2, (1, 1), ((0, 0), (0, 0)), dimension_numbers=dn,
        precision=jax.lax.Precision.HIGHEST)
    y = jax.nn.sigmoid(logits)                                     # (B, 4, Ho, Wo)
    B, _, Ho, Wo = y.shape
    idx_de = y.reshape(B, 1, 2, 2, Ho, Wo)
    idx_de = jnp.transpose(idx_de, (0, 1, 4, 2, 5, 3)).reshape(B, 1, 2 * Ho, 2 * Wo)
    mask = jax.nn.sigmoid(idx_de)
    up = jnp.repeat(jnp.repeat(feature_de, 2, axis=2), 2, axis=3)  # nearest x2
    return mask * up


if __name__ == "__main__":
    B, C, H, W = 2, 8, 16, 16          # in_channels = 8
    C_de = 8
    Ho, Wo = H // 2, W // 2

    key = jax.random.PRNGKey(0)
    k1, k2, k3, k4, k5, k6, k7, k8 = jax.random.split(key, 8)

    feature_en = jax.random.normal(k1, (B, C, H, W), jnp.float32)
    feature_de = jax.random.normal(k2, (B, C_de, Ho, Wo), jnp.float32)

    # HolisticIndexBlock parameters (deterministic, eval-mode BatchNorm).
    w1 = jax.random.normal(k3, (2 * C, C, 4, 4), jnp.float32) * 0.1   # Conv2d(C, 2C, 4, s=2, p=1)
    gamma = jax.random.uniform(k4, (2 * C,), jnp.float32, 0.5, 1.5)
    beta = jax.random.normal(k5, (2 * C,), jnp.float32) * 0.1
    mean = jax.random.normal(k6, (2 * C,), jnp.float32) * 0.1
    var = jax.random.uniform(k7, (2 * C,), jnp.float32, 0.5, 1.5)
    w2 = jax.random.normal(k8, (4, 2 * C, 1, 1), jnp.float32) * 0.1   # Conv2d(2C, 4, 1)

    params = (w1, gamma, beta, mean, var, w2)
    ref = reference(feature_en, feature_de, params)

    # 1) Layout/indexing validation: f32 compute path vs. f32 reference.
    out_f32 = jax.jit(functools.partial(indexup_forward, compute_dtype=jnp.float32))(
        feature_en, feature_de, params)
    out_f32 = jax.block_until_ready(out_f32)
    np.testing.assert_allclose(np.asarray(out_f32), np.asarray(ref), rtol=2e-2, atol=2e-2)

    # 2) Performance configuration: bf16 loads / f32 accumulate.
    out_bf16 = jax.jit(indexup_forward)(feature_en, feature_de, params)
    out_bf16 = jax.block_until_ready(out_bf16)
    np.testing.assert_allclose(np.asarray(out_bf16), np.asarray(ref), rtol=2e-2, atol=2e-2)

    print("KERNEL_OK")
</pallas_src>

<mosaic_0001>
module attributes {stable_mosaic.version = 11 : i64} {
  func.func @indexup_kernel(%arg0: i32, %arg1: i32, %arg2: memref<1x1x4x5x8x9xf32, #tpu.memory_space<vmem>>, %arg3: memref<16x128xf32, #tpu.memory_space<vmem>>, %arg4: memref<16x1xf32, #tpu.memory_space<vmem>>, %arg5: memref<4x16xf32, #tpu.memory_space<vmem>>, %arg6: memref<8x16xf32, #tpu.memory_space<vmem>>, %arg7: memref<8x16xf32, #tpu.memory_space<vmem>>, %arg8: memref<8x4xf32, #tpu.memory_space<vmem>>, %arg9: memref<1x8x1x4x8xf32, #tpu.memory_space<vmem>>, %arg10: memref<1x8x1x8x16xf32, #tpu.memory_space<vmem>>) attributes {dimension_semantics = [#tpu.dimension_semantics<parallel>, #tpu.dimension_semantics<parallel>], iteration_bounds = array<i64: 2, 2>, scalar_prefetch = 0 : i64, scratch_operands = 0 : i64, tpu.core_type = #tpu.core_type<tc>, window_params = [{transform_indices = @transform_0, window_bounds = array<i64: 1, 1, 4, 5, 8, 9>}, {pipeline_mode = #tpu.pipeline_mode<synchronous>, transform_indices = @transform_1, window_bounds = array<i64: 16, 128>}, {pipeline_mode = #tpu.pipeline_mode<synchronous>, transform_indices = @transform_2, window_bounds = array<i64: 16, 1>}, {pipeline_mode = #tpu.pipeline_mode<synchronous>, transform_indices = @transform_3, window_bounds = array<i64: 4, 16>}, {pipeline_mode = #tpu.pipeline_mode<synchronous>, transform_indices = @transform_4, window_bounds = array<i64: 8, 16>}, {pipeline_mode = #tpu.pipeline_mode<synchronous>, transform_indices = @transform_5, window_bounds = array<i64: 8, 16>}, {pipeline_mode = #tpu.pipeline_mode<synchronous>, transform_indices = @transform_6, window_bounds = array<i64: 8, 4>}, {transform_indices = @transform_7, window_bounds = array<i64: 1, 8, 1, 4, 8>}, {transform_indices = @transform_8, window_bounds = array<i64: 1, 8, 1, 8, 16>}]} {
    %c0 = arith.constant 0 : index
    %c0_0 = arith.constant 0 : index
    %0 = vector.load %arg3[%c0, %c0_0] : memref<16x128xf32, #tpu.memory_space<vmem>>, vector<16x128xf32>
    %c0_1 = arith.constant 0 : index
    %c0_2 = arith.constant 0 : index
    %1 = vector.load %arg4[%c0_1, %c0_2] : memref<16x1xf32, #tpu.memory_space<vmem>>, vector<16x1xf32>
    %c0_3 = arith.constant 0 : index
    %c0_4 = arith.constant 0 : index
    %2 = vector.load %arg5[%c0_3, %c0_4] : memref<4x16xf32, #tpu.memory_space<vmem>>, vector<4x16xf32>
    %c0_5 = arith.constant 0 : index
    %c0_6 = arith.constant 0 : index
    %3 = vector.load %arg6[%c0_5, %c0_6] : memref<8x16xf32, #tpu.memory_space<vmem>>, vector<8x16xf32>
    %c0_7 = arith.constant 0 : index
    %c0_8 = arith.constant 0 : index
    %4 = vector.load %arg7[%c0_7, %c0_8] : memref<8x16xf32, #tpu.memory_space<vmem>>, vector<8x16xf32>
    %c0_9 = arith.constant 0 : index
    %c0_10 = arith.constant 0 : index
    %5 = vector.load %arg8[%c0_9, %c0_10] : memref<8x4xf32, #tpu.memory_space<vmem>>, vector<8x4xf32>
    %6 = arith.addf %3, %4 : vector<8x16xf32>
    %c0_11 = arith.constant 0 : index
    %c0_12 = arith.constant 0 : index
    %c0_13 = arith.constant 0 : index
    %c0_14 = arith.constant 0 : index
    %c0_15 = arith.constant 0 : index
    %c0_16 = arith.constant 0 : index
    %7 = vector.load %arg2[%c0_11, %c0_12, %c0_13, %c0_14, %c0_15, %c0_16] : memref<1x1x4x5x8x9xf32, #tpu.memory_space<vmem>>, vector<1x1x1x1x8x8xf32>
    %8 = vector.shape_cast %7 : vector<1x1x1x1x8x8xf32> to vector<8x8xf32>
    %c0_17 = arith.constant 0 : index
    %c0_18 = arith.constant 0 : index
    %c1 = arith.constant 1 : index
    %c0_19 = arith.constant 0 : index
    %c0_20 = arith.constant 0 : index
    %c0_21 = arith.constant 0 : index
    %9 = vector.load %arg2[%c0_17, %c0_18, %c1, %c0_19, %c0_20, %c0_21] : memref<1x1x4x5x8x9xf32, #tpu.memory_space<vmem>>, vector<1x1x1x1x8x8xf32>
    %10 = vector.shape_cast %9 : vector<1x1x1x1x8x8xf32> to vector<8x8xf32>
    %c0_22 = arith.constant 0 : index
    %c0_23 = arith.constant 0 : index
    %c0_24 = arith.constant 0 : index
    %c0_25 = arith.constant 0 : index
    %c0_26 = arith.constant 0 : index
    %c1_27 = arith.constant 1 : index
    %11 = vector.load %arg2[%c0_22, %c0_23, %c0_24, %c0_25, %c0_26, %c1_27] : memref<1x1x4x5x8x9xf32, #tpu.memory_space<vmem>>, vector<1x1x1x1x8x8xf32>
    %12 = vector.shape_cast %11 : vector<1x1x1x1x8x8xf32> to vector<8x8xf32>
    %c0_28 = arith.constant 0 : index
    %c0_29 = arith.constant 0 : index
    %c1_30 = arith.constant 1 : index
    %c0_31 = arith.constant 0 : index
    %c0_32 = arith.constant 0 : index
    %c1_33 = arith.constant 1 : index
    %13 = vector.load %arg2[%c0_28, %c0_29, %c1_30, %c0_31, %c0_32, %c1_33] : memref<1x1x4x5x8x9xf32, #tpu.memory_space<vmem>>, vector<1x1x1x1x8x8xf32>
    %14 = vector.shape_cast %13 : vector<1x1x1x1x8x8xf32> to vector<8x8xf32>
    %c0_34 = arith.constant 0 : index
    %c0_35 = arith.constant 0 : index
    %c2 = arith.constant 2 : index
    %c0_36 = arith.constant 0 : index
    %c0_37 = arith.constant 0 : index
    %c0_38 = arith.constant 0 : index
    %15 = vector.load %arg2[%c0_34, %c0_35, %c2, %c0_36, %c0_37, %c0_38] : memref<1x1x4x5x8x9xf32, #tpu.memory_space<vmem>>, vector<1x1x1x1x8x8xf32>
    %16 = vector.shape_cast %15 : vector<1x1x1x1x8x8xf32> to vector<8x8xf32>
    %c0_39 = arith.constant 0 : index
    %c0_40 = arith.constant 0 : index
    %c3 = arith.constant 3 : index
    %c0_41 = arith.constant 0 : index
    %c0_42 = arith.constant 0 : index
    %c0_43 = arith.constant 0 : index
    %17 = vector.load %arg2[%c0_39, %c0_40, %c3, %c0_41, %c0_42, %c0_43] : memref<1x1x4x5x8x9xf32, #tpu.memory_space<vmem>>, vector<1x1x1x1x8x8xf32>
    %18 = vector.shape_cast %17 : vector<1x1x1x1x8x8xf32> to vector<8x8xf32>
    %c0_44 = arith.constant 0 : index
    %c0_45 = arith.constant 0 : index
    %c2_46 = arith.constant 2 : index
    %c0_47 = arith.constant 0 : index
    %c0_48 = arith.constant 0 : index
    %c1_49 = arith.constant 1 : index
    %19 = vector.load %arg2[%c0_44, %c0_45, %c2_46, %c0_47, %c0_48, %c1_49] : memref<1x1x4x5x8x9xf32, #tpu.memory_space<vmem>>, vector<1x1x1x1x8x8xf32>
    %20 = vector.shape_cast %19 : vector<1x1x1x1x8x8xf32> to vector<8x8xf32>
    %c0_50 = arith.constant 0 : index
    %c0_51 = arith.constant 0 : index
    %c3_52 = arith.constant 3 : index
    %c0_53 = arith.constant 0 : index
    %c0_54 = arith.constant 0 : index
    %c1_55 = arith.constant 1 : index
    %21 = vector.load %arg2[%c0_50, %c0_51, %c3_52, %c0_53, %c0_54, %c1_55] : memref<1x1x4x5x8x9xf32, #tpu.memory_space<vmem>>, vector<1x1x1x1x8x8xf32>
    %22 = vector.shape_cast %21 : vector<1x1x1x1x8x8xf32> to vector<8x8xf32>
    %c0_56 = arith.constant 0 : index
    %c0_57 = arith.constant 0 : index
    %c0_58 = arith.constant 0 : index
    %c1_59 = arith.constant 1 : index
    %c0_60 = arith.constant 0 : index
    %c0_61 = arith.constant 0 : index
    %23 = vector.load %arg2[%c0_56, %c0_57, %c0_58, %c1_59, %c0_60, %c0_61] : memref<1x1x4x5x8x9xf32, #tpu.memory_space<vmem>>, vector<1x1x1x1x8x8xf32>
    %24 = vector.shape_cast %23 : vector<1x1x1x1x8x8xf32> to vector<8x8xf32>
    %c0_62 = arith.constant 0 : index
    %c0_63 = arith.constant 0 : index
    %c1_64 = arith.constant 1 : index
    %c1_65 = arith.constant 1 : index
    %c0_66 = arith.constant 0 : index
    %c0_67 = arith.constant 0 : index
    %25 = vector.load %arg2[%c0_62, %c0_63, %c1_64, %c1_65, %c0_66, %c0_67] : memref<1x1x4x5x8x9xf32, #tpu.memory_space<vmem>>, vector<1x1x1x1x8x8xf32>
    %26 = vector.shape_cast %25 : vector<1x1x1x1x8x8xf32> to vector<8x8xf32>
    %c0_68 = arith.constant 0 : index
    %c0_69 = arith.constant 0 : index
    %c0_70 = arith.constant 0 : index
    %c1_71 = arith.constant 1 : index
    %c0_72 = arith.constant 0 : index
    %c1_73 = arith.constant 1 : index
    %27 = vector.load %arg2[%c0_68, %c0_69, %c0_70, %c1_71, %c0_72, %c1_73] : memref<1x1x4x5x8x9xf32, #tpu.memory_space<vmem>>, vector<1x1x1x1x8x8xf32>
    %28 = vector.shape_cast %27 : vector<1x1x1x1x8x8xf32> to vector<8x8xf32>
    %c0_74 = arith.constant 0 : index
    %c0_75 = arith.constant 0 : index
    %c1_76 = arith.constant 1 : index
    %c1_77 = arith.constant 1 : index
    %c0_78 = arith.constant 0 : index
    %c1_79 = arith.constant 1 : index
    %29 = vector.load %arg2[%c0_74, %c0_75, %c1_76, %c1_77, %c0_78, %c1_79] : memref<1x1x4x5x8x9xf32, #tpu.memory_space<vmem>>, vector<1x1x1x1x8x8xf32>
    %30 = vector.shape_cast %29 : vector<1x1x1x1x8x8xf32> to vector<8x8xf32>
    %c0_80 = arith.constant 0 : index
    %c0_81 = arith.constant 0 : index
    %c2_82 = arith.constant 2 : index
    %c1_83 = arith.constant 1 : index
    %c0_84 = arith.constant 0 : index
    %c0_85 = arith.constant 0 : index
    %31 = vector.load %arg2[%c0_80, %c0_81, %c2_82, %c1_83, %c0_84, %c0_85] : memref<1x1x4x5x8x9xf32, #tpu.memory_space<vmem>>, vector<1x1x1x1x8x8xf32>
    %32 = vector.shape_cast %31 : vector<1x1x1x1x8x8xf32> to vector<8x8xf32>
    %c0_86 = arith.constant 0 : index
    %c0_87 = arith.constant 0 : index
    %c3_88 = arith.constant 3 : index
    %c1_89 = arith.constant 1 : index
    %c0_90 = arith.constant 0 : index
    %c0_91 = arith.constant 0 : index
    %33 = vector.load %arg2[%c0_86, %c0_87, %c3_88, %c1_89, %c0_90, %c0_91] : memref<1x1x4x5x8x9xf32, #tpu.memory_space<vmem>>, vector<1x1x1x1x8x8xf32>
    %34 = vector.shape_cast %33 : vector<1x1x1x1x8x8xf32> to vector<8x8xf32>
    %c0_92 = arith.constant 0 : index
    %c0_93 = arith.constant 0 : index
    %c2_94 = arith.constant 2 : index
    %c1_95 = arith.constant 1 : index
    %c0_96 = arith.constant 0 : index
    %c1_97 = arith.constant 1 : index
    %35 = vector.load %arg2[%c0_92, %c0_93, %c2_94, %c1_95, %c0_96, %c1_97] : memref<1x1x4x5x8x9xf32, #tpu.memory_space<vmem>>, vector<1x1x1x1x8x8xf32>
    %36 = vector.shape_cast %35 : vector<1x1x1x1x8x8xf32> to vector<8x8xf32>
    %c0_98 = arith.constant 0 : index
    %c0_99 = arith.constant 0 : index
    %c3_100 = arith.constant 3 : index
    %c1_101 = arith.constant 1 : index
    %c0_102 = arith.constant 0 : index
    %c1_103 = arith.constant 1 : index
    %37 = vector.load %arg2[%c0_98, %c0_99, %c3_100, %c1_101, %c0_102, %c1_103] : memref<1x1x4x5x8x9xf32, #tpu.memory_space<vmem>>, vector<1x1x1x1x8x8xf32>
    %38 = vector.shape_cast %37 : vector<1x1x1x1x8x8xf32> to vector<8x8xf32>
    %39 = tpu.concatenate %8, %10, %12, %14, %16, %18, %20, %22, %24, %26, %28, %30, %32, %34, %36, %38 in 0 : vector<8x8xf32>, vector<8x8xf32>, vector<8x8xf32>, vector<8x8xf32>, vector<8x8xf32>, vector<8x8xf32>, vector<8x8xf32>, vector<8x8xf32>, vector<8x8xf32>, vector<8x8xf32>, vector<8x8xf32>, vector<8x8xf32>, vector<8x8xf32>, vector<8x8xf32>, vector<8x8xf32>, vector<8x8xf32> -> vector<128x8xf32>
    %cst = arith.constant dense<0.000000e+00> : vector<16x8xf32>
    %40 = tpu.matmul %0, %39, %cst {dimension_numbers = #tpu.dot_dimension_numbers<[1], [0], [0], [1], [0, 0, 1, 1], [], []>} : vector<16x128xf32>, vector<128x8xf32>, vector<16x8xf32> -> vector<16x8xf32>
    %41 = vector.broadcast %1 : vector<16x1xf32> to vector<16x8xf32>
    %42 = arith.addf %40, %41 : vector<16x8xf32>
    %cst_104 = arith.constant 0.000000e+00 : f32
    %cst_105 = arith.constant 6.000000e+00 : f32
    %43 = vector.broadcast %cst_104 : f32 to vector<16x8xf32>
    %44 = arith.maximumf %43, %42 : vector<16x8xf32>
    %45 = vector.broadcast %cst_105 : f32 to vector<16x8xf32>
    %46 = arith.minimumf %45, %44 : vector<16x8xf32>
    %cst_106 = arith.constant dense<0.000000e+00> : vector<4x8xf32>
    %47 = tpu.matmul %2, %46, %cst_106 {dimension_numbers = #tpu.dot_dimension_numbers<[1], [0], [0], [1], [0, 0, 1, 1], [], []>} : vector<4x16xf32>, vector<16x8xf32>, vector<4x8xf32> -> vector<4x8xf32>
    %48 = arith.negf %47 : vector<4x8xf32>
    %49 = math.exp %48 : vector<4x8xf32>
    %cst_107 = arith.constant 1.000000e+00 : f32
    %50 = vector.broadcast %cst_107 : f32 to vector<4x8xf32>
    %51 = arith.addf %50, %49 : vector<4x8xf32>
    %52 = arith.divf %50, %51 : vector<4x8xf32>
    %53 = arith.negf %52 : vector<4x8xf32>
    %54 = math.exp %53 : vector<4x8xf32>
    %cst_108 = arith.constant 1.000000e+00 : f32
    %55 = vector.broadcast %cst_108 : f32 to vector<4x8xf32>
    %56 = arith.addf %55, %54 : vector<4x8xf32>
    %57 = arith.divf %55, %56 : vector<4x8xf32>
    %58 = vector.extract_strided_slice %57 {offsets = [0, 0], sizes = [1, 8], strides = [1, 1]} : vector<4x8xf32> to vector<1x8xf32>
    %59 = vector.extract_strided_slice %57 {offsets = [2, 0], sizes = [1, 8], strides = [1, 1]} : vector<4x8xf32> to vector<1x8xf32>
    %60 = vector.extract_strided_slice %57 {offsets = [1, 0], sizes = [1, 8], strides = [1, 1]} : vector<4x8xf32> to vector<1x8xf32>
    %61 = vector.extract_strided_slice %57 {offsets = [3, 0], sizes = [1, 8], strides = [1, 1]} : vector<4x8xf32> to vector<1x8xf32>
    %c0_109 = arith.constant 0 : index
    %c0_110 = arith.constant 0 : index
    %c0_111 = arith.constant 0 : index
    %c1_112 = arith.constant 1 : index
    %c0_113 = arith.constant 0 : index
    %c0_114 = arith.constant 0 : index
    %62 = vector.load %arg2[%c0_109, %c0_110, %c0_111, %c1_112, %c0_113, %c0_114] : memref<1x1x4x5x8x9xf32, #tpu.memory_space<vmem>>, vector<1x1x1x1x8x8xf32>
    %63 = vector.shape_cast %62 : vector<1x1x1x1x8x8xf32> to vector<8x8xf32>
    %c0_115 = arith.constant 0 : index
    %c0_116 = arith.constant 0 : index
    %c1_117 = arith.constant 1 : index
    %c1_118 = arith.constant 1 : index
    %c0_119 = arith.constant 0 : index
    %c0_120 = arith.constant 0 : index
    %64 = vector.load %arg2[%c0_115, %c0_116, %c1_117, %c1_118, %c0_119, %c0_120] : memref<1x1x4x5x8x9xf32, #tpu.memory_space<vmem>>, vector<1x1x1x1x8x8xf32>
    %65 = vector.shape_cast %64 : vector<1x1x1x1x8x8xf32> to vector<8x8xf32>
    %c0_121 = arith.constant 0 : index
    %c0_122 = arith.constant 0 : index
    %c0_123 = arith.constant 0 : index
    %c1_124 = arith.constant 1 : index
    %c0_125 = arith.constant 0 : index
    %c1_126 = arith.constant 1 : index
    %66 = vector.load %arg2[%c0_121, %c0_122, %c0_123, %c1_124, %c0_125, %c1_126] : memref<1x1x4x5x8x9xf32, #tpu.memory_space<vmem>>, vector<1x1x1x1x8x8xf32>
    %67 = vector.shape_cast %66 : vector<1x1x1x1x8x8xf32> to vector<8x8xf32>
    %c0_127 = arith.constant 0 : index
    %c0_128 = arith.constant 0 : index
    %c1_129 = arith.constant 1 : index
    %c1_130 = arith.constant 1 : index
    %c0_131 = arith.constant 0 : index
    %c1_132 = arith.constant 1 : index
    %68 = vector.load %arg2[%c0_127, %c0_128, %c1_129, %c1_130, %c0_131, %c1_132] : memref<1x1x4x5x8x9xf32, #tpu.memory_space<vmem>>, vector<1x1x1x1x8x8xf32>
    %69 = vector.shape_cast %68 : vector<1x1x1x1x8x8xf32> to vector<8x8xf32>
    %c0_133 = arith.constant 0 : index
    %c0_134 = arith.constant 0 : index
    %c2_135 = arith.constant 2 : index
    %c1_136 = arith.constant 1 : index
    %c0_137 = arith.constant 0 : index
    %c0_138 = arith.constant 0 : index
    %70 = vector.load %arg2[%c0_133, %c0_134, %c2_135, %c1_136, %c0_137, %c0_138] : memref<1x1x4x5x8x9xf32, #tpu.memory_space<vmem>>, vector<1x1x1x1x8x8xf32>
    %71 = vector.shape_cast %70 : vector<1x1x1x1x8x8xf32> to vector<8x8xf32>
    %c0_139 = arith.constant 0 : index
    %c0_140 = arith.constant 0 : index
    %c3_141 = arith.constant 3 : index
    %c1_142 = arith.constant 1 : index
    %c0_143 = arith.constant 0 : index
    %c0_144 = arith.constant 0 : index
    %72 = vector.load %arg2[%c0_139, %c0_140, %c3_141, %c1_142, %c0_143, %c0_144] : memref<1x1x4x5x8x9xf32, #tpu.memory_space<vmem>>, vector<1x1x1x1x8x8xf32>
    %73 = vector.shape_cast %72 : vector<1x1x1x1x8x8xf32> to vector<8x8xf32>
    %c0_145 = arith.constant 0 : index
    %c0_146 = arith.constant 0 : index
    %c2_147 = arith.constant 2 : index
    %c1_148 = arith.constant 1 : index
    %c0_149 = arith.constant 0 : index
    %c1_150 = arith.constant 1 : index
    %74 = vector.load %arg2[%c0_145, %c0_146, %c2_147, %c1_148, %c0_149, %c1_150] : memref<1x1x4x5x8x9xf32, #tpu.memory_space<vmem>>, vector<1x1x1x1x8x8xf32>
    %75 = vector.shape_cast %74 : vector<1x1x1x1x8x8xf32> to vector<8x8xf32>
    %c0_151 = arith.constant 0 : index
    %c0_152 = arith.constant 0 : index
    %c3_153 = arith.constant 3 : index
    %c1_154 = arith.constant 1 : index
    %c0_155 = arith.constant 0 : index
    %c1_156 = arith.constant 1 : index
    %76 = vector.load %arg2[%c0_151, %c0_152, %c3_153, %c1_154, %c0_155, %c1_156] : memref<1x1x4x5x8x9xf32, #tpu.memory_space<vmem>>, vector<1x1x1x1x8x8xf32>
    %77 = vector.shape_cast %76 : vector<1x1x1x1x8x8xf32> to vector<8x8xf32>
    %c0_157 = arith.constant 0 : index
    %c0_158 = arith.constant 0 : index
    %c0_159 = arith.constant 0 : index
    %c2_160 = arith.constant 2 : index
    %c0_161 = arith.constant 0 : index
    %c0_162 = arith.constant 0 : index
    %78 = vector.load %arg2[%c0_157, %c0_158, %c0_159, %c2_160, %c0_161, %c0_162] : memref<1x1x4x5x8x9xf32, #tpu.memory_space<vmem>>, vector<1x1x1x1x8x8xf32>
    %79 = vector.shape_cast %78 : vector<1x1x1x1x8x8xf32> to vector<8x8xf32>
    %c0_163 = arith.constant 0 : index
    %c0_164 = arith.constant 0 : index
    %c1_165 = arith.constant 1 : index
    %c2_166 = arith.constant 2 : index
    %c0_167 = arith.constant 0 : index
    %c0_168 = arith.constant 0 : index
    %80 = vector.load %arg2[%c0_163, %c0_164, %c1_165, %c2_166, %c0_167, %c0_168] : memref<1x1x4x5x8x9xf32, #tpu.memory_space<vmem>>, vector<1x1x1x1x8x8xf32>
    %81 = vector.shape_cast %80 : vector<1x1x1x1x8x8xf32> to vector<8x8xf32>
    %c0_169 = arith.constant 0 : index
    %c0_170 = arith.constant 0 : index
    %c0_171 = arith.constant 0 : index
    %c2_172 = arith.constant 2 : index
    %c0_173 = arith.constant 0 : index
    %c1_174 = arith.constant 1 : index
    %82 = vector.load %arg2[%c0_169, %c0_170, %c0_171, %c2_172, %c0_173, %c1_174] : memref<1x1x4x5x8x9xf32, #tpu.memory_space<vmem>>, vector<1x1x1x1x8x8xf32>
    %83 = vector.shape_cast %82 : vector<1x1x1x1x8x8xf32> to vector<8x8xf32>
    %c0_175 = arith.constant 0 : index
    %c0_176 = arith.constant 0 : index
    %c1_177 = arith.constant 1 : index
    %c2_178 = arith.constant 2 : index
    %c0_179 = arith.constant 0 : index
    %c1_180 = arith.constant 1 : index
    %84 = vector.load %arg2[%c0_175, %c0_176, %c1_177, %c2_178, %c0_179, %c1_180] : memref<1x1x4x5x8x9xf32, #tpu.memory_space<vmem>>, vector<1x1x1x1x8x8xf32>
    %85 = vector.shape_cast %84 : vector<1x1x1x1x8x8xf32> to vector<8x8xf32>
    %c0_181 = arith.constant 0 : index
    %c0_182 = arith.constant 0 : index
    %c2_183 = arith.constant 2 : index
    %c2_184 = arith.constant 2 : index
    %c0_185 = arith.constant 0 : index
    %c0_186 = arith.constant 0 : index
    %86 = vector.load %arg2[%c0_181, %c0_182, %c2_183, %c2_184, %c0_185, %c0_186] : memref<1x1x4x5x8x9xf32, #tpu.memory_space<vmem>>, vector<1x1x1x1x8x8xf32>
    %87 = vector.shape_cast %86 : vector<1x1x1x1x8x8xf32> to vector<8x8xf32>
    %c0_187 = arith.constant 0 : index
    %c0_188 = arith.constant 0 : index
    %c3_189 = arith.constant 3 : index
    %c2_190 = arith.constant 2 : index
    %c0_191 = arith.constant 0 : index
    %c0_192 = arith.constant 0 : index
    %88 = vector.load %arg2[%c0_187, %c0_188, %c3_189, %c2_190, %c0_191, %c0_192] : memref<1x1x4x5x8x9xf32, #tpu.memory_space<vmem>>, vector<1x1x1x1x8x8xf32>
    %89 = vector.shape_cast %88 : vector<1x1x1x1x8x8xf32> to vector<8x8xf32>
    %c0_193 = arith.constant 0 : index
    %c0_194 = arith.constant 0 : index
    %c2_195 = arith.constant 2 : index
    %c2_196 = arith.constant 2 : index
    %c0_197 = arith.constant 0 : index
    %c1_198 = arith.constant 1 : index
    %90 = vector.load %arg2[%c0_193, %c0_194, %c2_195, %c2_196, %c0_197, %c1_198] : memref<1x1x4x5x8x9xf32, #tpu.memory_space<vmem>>, vector<1x1x1x1x8x8xf32>
    %91 = vector.shape_cast %90 : vector<1x1x1x1x8x8xf32> to vector<8x8xf32>
    %c0_199 = arith.constant 0 : index
    %c0_200 = arith.constant 0 : index
    %c3_201 = arith.constant 3 : index
    %c2_202 = arith.constant 2 : index
    %c0_203 = arith.constant 0 : index
    %c1_204 = arith.constant 1 : index
    %92 = vector.load %arg2[%c0_199, %c0_200, %c3_201, %c2_202, %c0_203, %c1_204] : memref<1x1x4x5x8x9xf32, #tpu.memory_space<vmem>>, vector<1x1x1x1x8x8xf32>
    %93 = vector.shape_cast %92 : vector<1x1x1x1x8x8xf32> to vector<8x8xf32>
    %94 = tpu.concatenate %63, %65, %67, %69, %71, %73, %75, %77, %79, %81, %83, %85, %87, %89, %91, %93 in 0 : vector<8x8xf32>, vector<8x8xf32>, vector<8x8xf32>, vector<8x8xf32>, vector<8x8xf32>, vector<8x8xf32>, vector<8x8xf32>, vector<8x8xf32>, vector<8x8xf32>, vector<8x8xf32>, vector<8x8xf32>, vector<8x8xf32>, vector<8x8xf32>, vector<8x8xf32>, vector<8x8xf32>, vector<8x8xf32> -> vector<128x8xf32>
    %cst_205 = arith.constant dense<0.000000e+00> : vector<16x8xf32>
    %95 = tpu.matmul %0, %94, %cst_205 {dimension_numbers = #tpu.dot_dimension_numbers<[1], [0], [0], [1], [0, 0, 1, 1], [], []>} : vector<16x128xf32>, vector<128x8xf32>, vector<16x8xf32> -> vector<16x8xf32>
    %96 = vector.broadcast %1 : vector<16x1xf32> to vector<16x8xf32>
    %97 = arith.addf %95, %96 : vector<16x8xf32>
    %cst_206 = arith.constant 0.000000e+00 : f32
    %cst_207 = arith.constant 6.000000e+00 : f32
    %98 = vector.broadcast %cst_206 : f32 to vector<16x8xf32>
    %99 = arith.maximumf %98, %97 : vector<16x8xf32>
    %100 = vector.broadcast %cst_207 : f32 to vector<16x8xf32>
    %101 = arith.minimumf %100, %99 : vector<16x8xf32>
    %cst_208 = arith.constant dense<0.000000e+00> : vector<4x8xf32>
    %102 = tpu.matmul %2, %101, %cst_208 {dimension_numbers = #tpu.dot_dimension_numbers<[1], [0], [0], [1], [0, 0, 1, 1], [], []>} : vector<4x16xf32>, vector<16x8xf32>, vector<4x8xf32> -> vector<4x8xf32>
    %103 = arith.negf %102 : vector<4x8xf32>
    %104 = math.exp %103 : vector<4x8xf32>
    %cst_209 = arith.constant 1.000000e+00 : f32
    %105 = vector.broadcast %cst_209 : f32 to vector<4x8xf32>
    %106 = arith.addf %105, %104 : vector<4x8xf32>
    %107 = arith.divf %105, %106 : vector<4x8xf32>
    %108 = arith.negf %107 : vector<4x8xf32>
    %109 = math.exp %108 : vector<4x8xf32>
    %cst_210 = arith.constant 1.000000e+00 : f32
    %110 = vector.broadcast %cst_210 : f32 to vector<4x8xf32>
    %111 = arith.addf %110, %109 : vector<4x8xf32>
    %112 = arith.divf %110, %111 : vector<4x8xf32>
    %113 = vector.extract_strided_slice %112 {offsets = [0, 0], sizes = [1, 8], strides = [1, 1]} : vector<4x8xf32> to vector<1x8xf32>
    %114 = vector.extract_strided_slice %112 {offsets = [2, 0], sizes = [1, 8], strides = [1, 1]} : vector<4x8xf32> to vector<1x8xf32>
    %115 = vector.extract_strided_slice %112 {offsets = [1, 0], sizes = [1, 8], strides = [1, 1]} : vector<4x8xf32> to vector<1x8xf32>
    %116 = vector.extract_strided_slice %112 {offsets = [3, 0], sizes = [1, 8], strides = [1, 1]} : vector<4x8xf32> to vector<1x8xf32>
    %c0_211 = arith.constant 0 : index
    %c0_212 = arith.constant 0 : index
    %c0_213 = arith.constant 0 : index
    %c2_214 = arith.constant 2 : index
    %c0_215 = arith.constant 0 : index
    %c0_216 = arith.constant 0 : index
    %117 = vector.load %arg2[%c0_211, %c0_212, %c0_213, %c2_214, %c0_215, %c0_216] : memref<1x1x4x5x8x9xf32, #tpu.memory_space<vmem>>, vector<1x1x1x1x8x8xf32>
    %118 = vector.shape_cast %117 : vector<1x1x1x1x8x8xf32> to vector<8x8xf32>
    %c0_217 = arith.constant 0 : index
    %c0_218 = arith.constant 0 : index
    %c1_219 = arith.constant 1 : index
    %c2_220 = arith.constant 2 : index
    %c0_221 = arith.constant 0 : index
    %c0_222 = arith.constant 0 : index
    %119 = vector.load %arg2[%c0_217, %c0_218, %c1_219, %c2_220, %c0_221, %c0_222] : memref<1x1x4x5x8x9xf32, #tpu.memory_space<vmem>>, vector<1x1x1x1x8x8xf32>
    %120 = vector.shape_cast %119 : vector<1x1x1x1x8x8xf32> to vector<8x8xf32>
    %c0_223 = arith.constant 0 : index
    %c0_224 = arith.constant 0 : index
    %c0_225 = arith.constant 0 : index
    %c2_226 = arith.constant 2 : index
    %c0_227 = arith.constant 0 : index
    %c1_228 = arith.constant 1 : index
    %121 = vector.load %arg2[%c0_223, %c0_224, %c0_225, %c2_226, %c0_227, %c1_228] : memref<1x1x4x5x8x9xf32, #tpu.memory_space<vmem>>, vector<1x1x1x1x8x8xf32>
    %122 = vector.shape_cast %121 : vector<1x1x1x1x8x8xf32> to vector<8x8xf32>
    %c0_229 = arith.constant 0 : index
    %c0_230 = arith.constant 0 : index
    %c1_231 = arith.constant 1 : index
    %c2_232 = arith.constant 2 : index
    %c0_233 = arith.constant 0 : index
    %c1_234 = arith.constant 1 : index
    %123 = vector.load %arg2[%c0_229, %c0_230, %c1_231, %c2_232, %c0_233, %c1_234] : memref<1x1x4x5x8x9xf32, #tpu.memory_space<vmem>>, vector<1x1x1x1x8x8xf32>
    %124 = vector.shape_cast %123 : vector<1x1x1x1x8x8xf32> to vector<8x8xf32>
    %c0_235 = arith.constant 0 : index
    %c0_236 = arith.constant 0 : index
    %c2_237 = arith.constant 2 : index
    %c2_238 = arith.constant 2 : index
    %c0_239 = arith.constant 0 : index
    %c0_240 = arith.constant 0 : index
    %125 = vector.load %arg2[%c0_235, %c0_236, %c2_237, %c2_238, %c0_239, %c0_240] : memref<1x1x4x5x8x9xf32, #tpu.memory_space<vmem>>, vector<1x1x1x1x8x8xf32>
    %126 = vector.shape_cast %125 : vector<1x1x1x1x8x8xf32> to vector<8x8xf32>
    %c0_241 = arith.constant 0 : index
    %c0_242 = arith.constant 0 : index
    %c3_243 = arith.constant 3 : index
    %c2_244 = arith.constant 2 : index
    %c0_245 = arith.constant 0 : index
    %c0_246 = arith.constant 0 : index
    %127 = vector.load %arg2[%c0_241, %c0_242, %c3_243, %c2_244, %c0_245, %c0_246] : memref<1x1x4x5x8x9xf32, #tpu.memory_space<vmem>>, vector<1x1x1x1x8x8xf32>
    %128 = vector.shape_cast %127 : vector<1x1x1x1x8x8xf32> to vector<8x8xf32>
    %c0_247 = arith.constant 0 : index
    %c0_248 = arith.constant 0 : index
    %c2_249 = arith.constant 2 : index
    %c2_250 = arith.constant 2 : index
    %c0_251 = arith.constant 0 : index
    %c1_252 = arith.constant 1 : index
    %129 = vector.load %arg2[%c0_247, %c0_248, %c2_249, %c2_250, %c0_251, %c1_252] : memref<1x1x4x5x8x9xf32, #tpu.memory_space<vmem>>, vector<1x1x1x1x8x8xf32>
    %130 = vector.shape_cast %129 : vector<1x1x1x1x8x8xf32> to vector<8x8xf32>
    %c0_253 = arith.constant 0 : index
    %c0_254 = arith.constant 0 : index
    %c3_255 = arith.constant 3 : index
    %c2_256 = arith.constant 2 : index
    %c0_257 = arith.constant 0 : index
    %c1_258 = arith.constant 1 : index
    %131 = vector.load %arg2[%c0_253, %c0_254, %c3_255, %c2_256, %c0_257, %c1_258] : memref<1x1x4x5x8x9xf32, #tpu.memory_space<vmem>>, vector<1x1x1x1x8x8xf32>
    %132 = vector.shape_cast %131 : vector<1x1x1x1x8x8xf32> to vector<8x8xf32>
    %c0_259 = arith.constant 0 : index
    %c0_260 = arith.constant 0 : index
    %c0_261 = arith.constant 0 : index
    %c3_262 = arith.constant 3 : index
    %c0_263 = arith.constant 0 : index
    %c0_264 = arith.constant 0 : index
    %133 = vector.load %arg2[%c0_259, %c0_260, %c0_261, %c3_262, %c0_263, %c0_264] : memref<1x1x4x5x8x9xf32, #tpu.memory_space<vmem>>, vector<1x1x1x1x8x8xf32>
    %134 = vector.shape_cast %133 : vector<1x1x1x1x8x8xf32> to vector<8x8xf32>
    %c0_265 = arith.constant 0 : index
    %c0_266 = arith.constant 0 : index
    %c1_267 = arith.constant 1 : index
    %c3_268 = arith.constant 3 : index
    %c0_269 = arith.constant 0 : index
    %c0_270 = arith.constant 0 : index
    %135 = vector.load %arg2[%c0_265, %c0_266, %c1_267, %c3_268, %c0_269, %c0_270] : memref<1x1x4x5x8x9xf32, #tpu.memory_space<vmem>>, vector<1x1x1x1x8x8xf32>
    %136 = vector.shape_cast %135 : vector<1x1x1x1x8x8xf32> to vector<8x8xf32>
    %c0_271 = arith.constant 0 : index
    %c0_272 = arith.constant 0 : index
    %c0_273 = arith.constant 0 : index
    %c3_274 = arith.constant 3 : index
    %c0_275 = arith.constant 0 : index
    %c1_276 = arith.constant 1 : index
    %137 = vector.load %arg2[%c0_271, %c0_272, %c0_273, %c3_274, %c0_275, %c1_276] : memref<1x1x4x5x8x9xf32, #tpu.memory_space<vmem>>, vector<1x1x1x1x8x8xf32>
    %138 = vector.shape_cast %137 : vector<1x1x1x1x8x8xf32> to vector<8x8xf32>
    %c0_277 = arith.constant 0 : index
    %c0_278 = arith.constant 0 : index
    %c1_279 = arith.constant 1 : index
    %c3_280 = arith.constant 3 : index
    %c0_281 = arith.constant 0 : index
    %c1_282 = arith.constant 1 : index
    %139 = vector.load %arg2[%c0_277, %c0_278, %c1_279, %c3_280, %c0_281, %c1_282] : memref<1x1x4x5x8x9xf32, #tpu.memory_space<vmem>>, vector<1x1x1x1x8x8xf32>
    %140 = vector.shape_cast %139 : vector<1x1x1x1x8x8xf32> to vector<8x8xf32>
    %c0_283 = arith.constant 0 : index
    %c0_284 = arith.constant 0 : index
    %c2_285 = arith.constant 2 : index
    %c3_286 = arith.constant 3 : index
    %c0_287 = arith.constant 0 : index
    %c0_288 = arith.constant 0 : index
    %141 = vector.load %arg2[%c0_283, %c0_284, %c2_285, %c3_286, %c0_287, %c0_288] : memref<1x1x4x5x8x9xf32, #tpu.memory_space<vmem>>, vector<1x1x1x1x8x8xf32>
    %142 = vector.shape_cast %141 : vector<1x1x1x1x8x8xf32> to vector<8x8xf32>
    %c0_289 = arith.constant 0 : index
    %c0_290 = arith.constant 0 : index
    %c3_291 = arith.constant 3 : index
    %c3_292 = arith.constant 3 : index
    %c0_293 = arith.constant 0 : index
    %c0_294 = arith.constant 0 : index
    %143 = vector.load %arg2[%c0_289, %c0_290, %c3_291, %c3_292, %c0_293, %c0_294] : memref<1x1x4x5x8x9xf32, #tpu.memory_space<vmem>>, vector<1x1x1x1x8x8xf32>
    %144 = vector.shape_cast %143 : vector<1x1x1x1x8x8xf32> to vector<8x8xf32>
    %c0_295 = arith.constant 0 : index
    %c0_296 = arith.constant 0 : index
    %c2_297 = arith.constant 2 : index
    %c3_298 = arith.constant 3 : index
    %c0_299 = arith.constant 0 : index
    %c1_300 = arith.constant 1 : index
    %145 = vector.load %arg2[%c0_295, %c0_296, %c2_297, %c3_298, %c0_299, %c1_300] : memref<1x1x4x5x8x9xf32, #tpu.memory_space<vmem>>, vector<1x1x1x1x8x8xf32>
    %146 = vector.shape_cast %145 : vector<1x1x1x1x8x8xf32> to vector<8x8xf32>
    %c0_301 = arith.constant 0 : index
    %c0_302 = arith.constant 0 : index
    %c3_303 = arith.constant 3 : index
    %c3_304 = arith.constant 3 : index
    %c0_305 = arith.constant 0 : index
    %c1_306 = arith.constant 1 : index
    %147 = vector.load %arg2[%c0_301, %c0_302, %c3_303, %c3_304, %c0_305, %c1_306] : memref<1x1x4x5x8x9xf32, #tpu.memory_space<vmem>>, vector<1x1x1x1x8x8xf32>
    %148 = vector.shape_cast %147 : vector<1x1x1x1x8x8xf32> to vector<8x8xf32>
    %149 = tpu.concatenate %118, %120, %122, %124, %126, %128, %130, %132, %134, %136, %138, %140, %142, %144, %146, %148 in 0 : vector<8x8xf32>, vector<8x8xf32>, vector<8x8xf32>, vector<8x8xf32>, vector<8x8xf32>, vector<8x8xf32>, vector<8x8xf32>, vector<8x8xf32>, vector<8x8xf32>, vector<8x8xf32>, vector<8x8xf32>, vector<8x8xf32>, vector<8x8xf32>, vector<8x8xf32>, vector<8x8xf32>, vector<8x8xf32> -> vector<128x8xf32>
    %cst_307 = arith.constant dense<0.000000e+00> : vector<16x8xf32>
    %150 = tpu.matmul %0, %149, %cst_307 {dimension_numbers = #tpu.dot_dimension_numbers<[1], [0], [0], [1], [0, 0, 1, 1], [], []>} : vector<16x128xf32>, vector<128x8xf32>, vector<16x8xf32> -> vector<16x8xf32>
    %151 = vector.broadcast %1 : vector<16x1xf32> to vector<16x8xf32>
    %152 = arith.addf %150, %151 : vector<16x8xf32>
    %cst_308 = arith.constant 0.000000e+00 : f32
    %cst_309 = arith.constant 6.000000e+00 : f32
    %153 = vector.broadcast %cst_308 : f32 to vector<16x8xf32>
    %154 = arith.maximumf %153, %152 : vector<16x8xf32>
    %155 = vector.broadcast %cst_309 : f32 to vector<16x8xf32>
    %156 = arith.minimumf %155, %154 : vector<16x8xf32>
    %cst_310 = arith.constant dense<0.000000e+00> : vector<4x8xf32>
    %157 = tpu.matmul %2, %156, %cst_310 {dimension_numbers = #tpu.dot_dimension_numbers<[1], [0], [0], [1], [0, 0, 1, 1], [], []>} : vector<4x16xf32>, vector<16x8xf32>, vector<4x8xf32> -> vector<4x8xf32>
    %158 = arith.negf %157 : vector<4x8xf32>
    %159 = math.exp %158 : vector<4x8xf32>
    %cst_311 = arith.constant 1.000000e+00 : f32
    %160 = vector.broadcast %cst_311 : f32 to vector<4x8xf32>
    %161 = arith.addf %160, %159 : vector<4x8xf32>
    %162 = arith.divf %160, %161 : vector<4x8xf32>
    %163 = arith.negf %162 : vector<4x8xf32>
    %164 = math.exp %163 : vector<4x8xf32>
    %cst_312 = arith.constant 1.000000e+00 : f32
    %165 = vector.broadcast %cst_312 : f32 to vector<4x8xf32>
    %166 = arith.addf %165, %164 : vector<4x8xf32>
    %167 = arith.divf %165, %166 : vector<4x8xf32>
    %168 = vector.extract_strided_slice %167 {offsets = [0, 0], sizes = [1, 8], strides = [1, 1]} : vector<4x8xf32> to vector<1x8xf32>
    %169 = vector.extract_strided_slice %167 {offsets = [2, 0], sizes = [1, 8], strides = [1, 1]} : vector<4x8xf32> to vector<1x8xf32>
    %170 = vector.extract_strided_slice %167 {offsets = [1, 0], sizes = [1, 8], strides = [1, 1]} : vector<4x8xf32> to vector<1x8xf32>
    %171 = vector.extract_strided_slice %167 {offsets = [3, 0], sizes = [1, 8], strides = [1, 1]} : vector<4x8xf32> to vector<1x8xf32>
    %c0_313 = arith.constant 0 : index
    %c0_314 = arith.constant 0 : index
    %c0_315 = arith.constant 0 : index
    %c3_316 = arith.constant 3 : index
    %c0_317 = arith.constant 0 : index
    %c0_318 = arith.constant 0 : index
    %172 = vector.load %arg2[%c0_313, %c0_314, %c0_315, %c3_316, %c0_317, %c0_318] : memref<1x1x4x5x8x9xf32, #tpu.memory_space<vmem>>, vector<1x1x1x1x8x8xf32>
    %173 = vector.shape_cast %172 : vector<1x1x1x1x8x8xf32> to vector<8x8xf32>
    %c0_319 = arith.constant 0 : index
    %c0_320 = arith.constant 0 : index
    %c1_321 = arith.constant 1 : index
    %c3_322 = arith.constant 3 : index
    %c0_323 = arith.constant 0 : index
    %c0_324 = arith.constant 0 : index
    %174 = vector.load %arg2[%c0_319, %c0_320, %c1_321, %c3_322, %c0_323, %c0_324] : memref<1x1x4x5x8x9xf32, #tpu.memory_space<vmem>>, vector<1x1x1x1x8x8xf32>
    %175 = vector.shape_cast %174 : vector<1x1x1x1x8x8xf32> to vector<8x8xf32>
    %c0_325 = arith.constant 0 : index
    %c0_326 = arith.constant 0 : index
    %c0_327 = arith.constant 0 : index
    %c3_328 = arith.constant 3 : index
    %c0_329 = arith.constant 0 : index
    %c1_330 = arith.constant 1 : index
    %176 = vector.load %arg2[%c0_325, %c0_326, %c0_327, %c3_328, %c0_329, %c1_330] : memref<1x1x4x5x8x9xf32, #tpu.memory_space<vmem>>, vector<1x1x1x1x8x8xf32>
    %177 = vector.shape_cast %176 : vector<1x1x1x1x8x8xf32> to vector<8x8xf32>
    %c0_331 = arith.constant 0 : index
    %c0_332 = arith.constant 0 : index
    %c1_333 = arith.constant 1 : index
    %c3_334 = arith.constant 3 : index
    %c0_335 = arith.constant 0 : index
    %c1_336 = arith.constant 1 : index
    %178 = vector.load %arg2[%c0_331, %c0_332, %c1_333, %c3_334, %c0_335, %c1_336] : memref<1x1x4x5x8x9xf32, #tpu.memory_space<vmem>>, vector<1x1x1x1x8x8xf32>
    %179 = vector.shape_cast %178 : vector<1x1x1x1x8x8xf32> to vector<8x8xf32>
    %c0_337 = arith.constant 0 : index
    %c0_338 = arith.constant 0 : index
    %c2_339 = arith.constant 2 : index
    %c3_340 = arith.constant 3 : index
    %c0_341 = arith.constant 0 : index
    %c0_342 = arith.constant 0 : index
    %180 = vector.load %arg2[%c0_337, %c0_338, %c2_339, %c3_340, %c0_341, %c0_342] : memref<1x1x4x5x8x9xf32, #tpu.memory_space<vmem>>, vector<1x1x1x1x8x8xf32>
    %181 = vector.shape_cast %180 : vector<1x1x1x1x8x8xf32> to vector<8x8xf32>
    %c0_343 = arith.constant 0 : index
    %c0_344 = arith.constant 0 : index
    %c3_345 = arith.constant 3 : index
    %c3_346 = arith.constant 3 : index
    %c0_347 = arith.constant 0 : index
    %c0_348 = arith.constant 0 : index
    %182 = vector.load %arg2[%c0_343, %c0_344, %c3_345, %c3_346, %c0_347, %c0_348] : memref<1x1x4x5x8x9xf32, #tpu.memory_space<vmem>>, vector<1x1x1x1x8x8xf32>
    %183 = vector.shape_cast %182 : vector<1x1x1x1x8x8xf32> to vector<8x8xf32>
    %c0_349 = arith.constant 0 : index
    %c0_350 = arith.constant 0 : index
    %c2_351 = arith.constant 2 : index
    %c3_352 = arith.constant 3 : index
    %c0_353 = arith.constant 0 : index
    %c1_354 = arith.constant 1 : index
    %184 = vector.load %arg2[%c0_349, %c0_350, %c2_351, %c3_352, %c0_353, %c1_354] : memref<1x1x4x5x8x9xf32, #tpu.memory_space<vmem>>, vector<1x1x1x1x8x8xf32>
    %185 = vector.shape_cast %184 : vector<1x1x1x1x8x8xf32> to vector<8x8xf32>
    %c0_355 = arith.constant 0 : index
    %c0_356 = arith.constant 0 : index
    %c3_357 = arith.constant 3 : index
    %c3_358 = arith.constant 3 : index
    %c0_359 = arith.constant 0 : index
    %c1_360 = arith.constant 1 : index
    %186 = vector.load %arg2[%c0_355, %c0_356, %c3_357, %c3_358, %c0_359, %c1_360] : memref<1x1x4x5x8x9xf32, #tpu.memory_space<vmem>>, vector<1x1x1x1x8x8xf32>
    %187 = vector.shape_cast %186 : vector<1x1x1x1x8x8xf32> to vector<8x8xf32>
    %c0_361 = arith.constant 0 : index
    %c0_362 = arith.constant 0 : index
    %c0_363 = arith.constant 0 : index
    %c4 = arith.constant 4 : index
    %c0_364 = arith.constant 0 : index
    %c0_365 = arith.constant 0 : index
    %188 = vector.load %arg2[%c0_361, %c0_362, %c0_363, %c4, %c0_364, %c0_365] : memref<1x1x4x5x8x9xf32, #tpu.memory_space<vmem>>, vector<1x1x1x1x8x8xf32>
    %189 = vector.shape_cast %188 : vector<1x1x1x1x8x8xf32> to vector<8x8xf32>
    %c0_366 = arith.constant 0 : index
    %c0_367 = arith.constant 0 : index
    %c1_368 = arith.constant 1 : index
    %c4_369 = arith.constant 4 : index
    %c0_370 = arith.constant 0 : index
    %c0_371 = arith.constant 0 : index
    %190 = vector.load %arg2[%c0_366, %c0_367, %c1_368, %c4_369, %c0_370, %c0_371] : memref<1x1x4x5x8x9xf32, #tpu.memory_space<vmem>>, vector<1x1x1x1x8x8xf32>
    %191 = vector.shape_cast %190 : vector<1x1x1x1x8x8xf32> to vector<8x8xf32>
    %c0_372 = arith.constant 0 : index
    %c0_373 = arith.constant 0 : index
    %c0_374 = arith.constant 0 : index
    %c4_375 = arith.constant 4 : index
    %c0_376 = arith.constant 0 : index
    %c1_377 = arith.constant 1 : index
    %192 = vector.load %arg2[%c0_372, %c0_373, %c0_374, %c4_375, %c0_376, %c1_377] : memref<1x1x4x5x8x9xf32, #tpu.memory_space<vmem>>, vector<1x1x1x1x8x8xf32>
    %193 = vector.shape_cast %192 : vector<1x1x1x1x8x8xf32> to vector<8x8xf32>
    %c0_378 = arith.constant 0 : index
    %c0_379 = arith.constant 0 : index
    %c1_380 = arith.constant 1 : index
    %c4_381 = arith.constant 4 : index
    %c0_382 = arith.constant 0 : index
    %c1_383 = arith.constant 1 : index
    %194 = vector.load %arg2[%c0_378, %c0_379, %c1_380, %c4_381, %c0_382, %c1_383] : memref<1x1x4x5x8x9xf32, #tpu.memory_space<vmem>>, vector<1x1x1x1x8x8xf32>
    %195 = vector.shape_cast %194 : vector<1x1x1x1x8x8xf32> to vector<8x8xf32>
    %c0_384 = arith.constant 0 : index
    %c0_385 = arith.constant 0 : index
    %c2_386 = arith.constant 2 : index
    %c4_387 = arith.constant 4 : index
    %c0_388 = arith.constant 0 : index
    %c0_389 = arith.constant 0 : index
    %196 = vector.load %arg2[%c0_384, %c0_385, %c2_386, %c4_387, %c0_388, %c0_389] : memref<1x1x4x5x8x9xf32, #tpu.memory_space<vmem>>, vector<1x1x1x1x8x8xf32>
    %197 = vector.shape_cast %196 : vector<1x1x1x1x8x8xf32> to vector<8x8xf32>
    %c0_390 = arith.constant 0 : index
    %c0_391 = arith.constant 0 : index
    %c3_392 = arith.constant 3 : index
    %c4_393 = arith.constant 4 : index
    %c0_394 = arith.constant 0 : index
    %c0_395 = arith.constant 0 : index
    %198 = vector.load %arg2[%c0_390, %c0_391, %c3_392, %c4_393, %c0_394, %c0_395] : memref<1x1x4x5x8x9xf32, #tpu.memory_space<vmem>>, vector<1x1x1x1x8x8xf32>
    %199 = vector.shape_cast %198 : vector<1x1x1x1x8x8xf32> to vector<8x8xf32>
    %c0_396 = arith.constant 0 : index
    %c0_397 = arith.constant 0 : index
    %c2_398 = arith.constant 2 : index
    %c4_399 = arith.constant 4 : index
    %c0_400 = arith.constant 0 : index
    %c1_401 = arith.constant 1 : index
    %200 = vector.load %arg2[%c0_396, %c0_397, %c2_398, %c4_399, %c0_400, %c1_401] : memref<1x1x4x5x8x9xf32, #tpu.memory_space<vmem>>, vector<1x1x1x1x8x8xf32>
    %201 = vector.shape_cast %200 : vector<1x1x1x1x8x8xf32> to vector<8x8xf32>
    %c0_402 = arith.constant 0 : index
    %c0_403 = arith.constant 0 : index
    %c3_404 = arith.constant 3 : index
    %c4_405 = arith.constant 4 : index
    %c0_406 = arith.constant 0 : index
    %c1_407 = arith.constant 1 : index
    %202 = vector.load %arg2[%c0_402, %c0_403, %c3_404, %c4_405, %c0_406, %c1_407] : memref<1x1x4x5x8x9xf32, #tpu.memory_space<vmem>>, vector<1x1x1x1x8x8xf32>
    %203 = vector.shape_cast %202 : vector<1x1x1x1x8x8xf32> to vector<8x8xf32>
    %204 = tpu.concatenate %173, %175, %177, %179, %181, %183, %185, %187, %189, %191, %193, %195, %197, %199, %201, %203 in 0 : vector<8x8xf32>, vector<8x8xf32>, vector<8x8xf32>, vector<8x8xf32>, vector<8x8xf32>, vector<8x8xf32>, vector<8x8xf32>, vector<8x8xf32>, vector<8x8xf32>, vector<8x8xf32>, vector<8x8xf32>, vector<8x8xf32>, vector<8x8xf32>, vector<8x8xf32>, vector<8x8xf32>, vector<8x8xf32> -> vector<128x8xf32>
    %cst_408 = arith.constant dense<0.000000e+00> : vector<16x8xf32>
    %205 = tpu.matmul %0, %204, %cst_408 {dimension_numbers = #tpu.dot_dimension_numbers<[1], [0], [0], [1], [0, 0, 1, 1], [], []>} : vector<16x128xf32>, vector<128x8xf32>, vector<16x8xf32> -> vector<16x8xf32>
    %206 = vector.broadcast %1 : vector<16x1xf32> to vector<16x8xf32>
    %207 = arith.addf %205, %206 : vector<16x8xf32>
    %cst_409 = arith.constant 0.000000e+00 : f32
    %cst_410 = arith.constant 6.000000e+00 : f32
    %208 = vector.broadcast %cst_409 : f32 to vector<16x8xf32>
    %209 = arith.maximumf %208, %207 : vector<16x8xf32>
    %210 = vector.broadcast %cst_410 : f32 to vector<16x8xf32>
    %211 = arith.minimumf %210, %209 : vector<16x8xf32>
    %cst_411 = arith.constant dense<0.000000e+00> : vector<4x8xf32>
    %212 = tpu.matmul %2, %211, %cst_411 {dimension_numbers = #tpu.dot_dimension_numbers<[1], [0], [0], [1], [0, 0, 1, 1], [], []>} : vector<4x16xf32>, vector<16x8xf32>, vector<4x8xf32> -> vector<4x8xf32>
    %213 = arith.negf %212 : vector<4x8xf32>
    %214 = math.exp %213 : vector<4x8xf32>
    %cst_412 = arith.constant 1.000000e+00 : f32
    %215 = vector.broadcast %cst_412 : f32 to vector<4x8xf32>
    %216 = arith.addf %215, %214 : vector<4x8xf32>
    %217 = arith.divf %215, %216 : vector<4x8xf32>
    %218 = arith.negf %217 : vector<4x8xf32>
    %219 = math.exp %218 : vector<4x8xf32>
    %cst_413 = arith.constant 1.000000e+00 : f32
    %220 = vector.broadcast %cst_413 : f32 to vector<4x8xf32>
    %221 = arith.addf %220, %219 : vector<4x8xf32>
    %222 = arith.divf %220, %221 : vector<4x8xf32>
    %223 = vector.extract_strided_slice %222 {offsets = [0, 0], sizes = [1, 8], strides = [1, 1]} : vector<4x8xf32> to vector<1x8xf32>
    %224 = vector.extract_strided_slice %222 {offsets = [2, 0], sizes = [1, 8], strides = [1, 1]} : vector<4x8xf32> to vector<1x8xf32>
    %225 = vector.extract_strided_slice %222 {offsets = [1, 0], sizes = [1, 8], strides = [1, 1]} : vector<4x8xf32> to vector<1x8xf32>
    %226 = vector.extract_strided_slice %222 {offsets = [3, 0], sizes = [1, 8], strides = [1, 1]} : vector<4x8xf32> to vector<1x8xf32>
    %227 = tpu.concatenate %58, %59, %113, %114, %168, %169, %223, %224 in 0 : vector<1x8xf32>, vector<1x8xf32>, vector<1x8xf32>, vector<1x8xf32>, vector<1x8xf32>, vector<1x8xf32>, vector<1x8xf32>, vector<1x8xf32> -> vector<8x8xf32>
    %228 = tpu.concatenate %60, %61, %115, %116, %170, %171, %225, %226 in 0 : vector<1x8xf32>, vector<1x8xf32>, vector<1x8xf32>, vector<1x8xf32>, vector<1x8xf32>, vector<1x8xf32>, vector<1x8xf32>, vector<1x8xf32> -> vector<8x8xf32>
    %cst_414 = arith.constant dense<0.000000e+00> : vector<8x16xf32>
    %229 = tpu.matmul %227, %3, %cst_414 {dimension_numbers = #tpu.dot_dimension_numbers<[1], [0], [0], [1], [0, 0, 1, 1], [], []>} : vector<8x8xf32>, vector<8x16xf32>, vector<8x16xf32> -> vector<8x16xf32>
    %cst_415 = arith.constant dense<0.000000e+00> : vector<8x16xf32>
    %230 = tpu.matmul %228, %4, %cst_415 {dimension_numbers = #tpu.dot_dimension_numbers<[1], [0], [0], [1], [0, 0, 1, 1], [], []>} : vector<8x8xf32>, vector<8x16xf32>, vector<8x16xf32> -> vector<8x16xf32>
    %231 = arith.addf %229, %230 : vector<8x16xf32>
    %c0_416 = arith.constant 0 : index
    %c0_417 = arith.constant 0 : index
    %c0_418 = arith.constant 0 : index
    %c0_419 = arith.constant 0 : index
    %c0_420 = arith.constant 0 : index
    %232 = vector.load %arg9[%c0_416, %c0_417, %c0_418, %c0_419, %c0_420] : memref<1x8x1x4x8xf32, #tpu.memory_space<vmem>>, vector<1x1x1x4x8xf32>
    %233 = vector.shape_cast %232 : vector<1x1x1x4x8xf32> to vector<4x8xf32>
    %cst_421 = arith.constant dense<0.000000e+00> : vector<4x16xf32>
    %234 = tpu.matmul %233, %6, %cst_421 {dimension_numbers = #tpu.dot_dimension_numbers<[1], [0], [0], [1], [0, 0, 1, 1], [], []>} : vector<4x8xf32>, vector<8x16xf32>, vector<4x16xf32> -> vector<4x16xf32>
    %cst_422 = arith.constant dense<0.000000e+00> : vector<8x16xf32>
    %235 = tpu.matmul %5, %234, %cst_422 {dimension_numbers = #tpu.dot_dimension_numbers<[1], [0], [0], [1], [0, 0, 1, 1], [], []>} : vector<8x4xf32>, vector<4x16xf32>, vector<8x16xf32> -> vector<8x16xf32>
    %236 = arith.mulf %231, %235 : vector<8x16xf32>
    %c0_423 = arith.constant 0 : index
    %c0_424 = arith.constant 0 : index
    %c0_425 = arith.constant 0 : index
    %c0_426 = arith.constant 0 : index
    %c0_427 = arith.constant 0 : index
    %237 = vector.load %arg10[%c0_423, %c0_424, %c0_425, %c0_426, %c0_427] : memref<1x8x1x8x16xf32, #tpu.memory_space<vmem>>, vector<1x1x1x8x16xf32>
    %238 = vector.shape_cast %237 : vector<1x1x1x8x16xf32> to vector<8x16xf32>
    %239 = vector.shape_cast %236 : vector<8x16xf32> to vector<1x1x1x8x16xf32>
    tpu.vector_store %arg10[%c0_423, %c0_424, %c0_425, %c0_426, %c0_427], %239 {strides = array<i32>} : memref<1x8x1x8x16xf32, #tpu.memory_space<vmem>>, vector<1x1x1x8x16xf32>,
    %c0_428 = arith.constant 0 : index
    %c1_429 = arith.constant 1 : index
    %c0_430 = arith.constant 0 : index
    %c0_431 = arith.constant 0 : index
    %c0_432 = arith.constant 0 : index
    %240 = vector.load %arg9[%c0_428, %c1_429, %c0_430, %c0_431, %c0_432] : memref<1x8x1x4x8xf32, #tpu.memory_space<vmem>>, vector<1x1x1x4x8xf32>
    %241 = vector.shape_cast %240 : vector<1x1x1x4x8xf32> to vector<4x8xf32>
    %cst_433 = arith.constant dense<0.000000e+00> : vector<4x16xf32>
    %242 = tpu.matmul %241, %6, %cst_433 {dimension_numbers = #tpu.dot_dimension_numbers<[1], [0], [0], [1], [0, 0, 1, 1], [], []>} : vector<4x8xf32>, vector<8x16xf32>, vector<4x16xf32> -> vector<4x16xf32>
    %cst_434 = arith.constant dense<0.000000e+00> : vector<8x16xf32>
    %243 = tpu.matmul %5, %242, %cst_434 {dimension_numbers = #tpu.dot_dimension_numbers<[1], [0], [0], [1], [0, 0, 1, 1], [], []>} : vector<8x4xf32>, vector<4x16xf32>, vector<8x16xf32> -> vector<8x16xf32>
    %244 = arith.mulf %231, %243 : vector<8x16xf32>
    %c0_435 = arith.constant 0 : index
    %c1_436 = arith.constant 1 : index
    %c0_437 = arith.constant 0 : index
    %c0_438 = arith.constant 0 : index
    %c0_439 = arith.constant 0 : index
    %245 = vector.load %arg10[%c0_435, %c1_436, %c0_437, %c0_438, %c0_439] : memref<1x8x1x8x16xf32, #tpu.memory_space<vmem>>, vector<1x1x1x8x16xf32>
    %246 = vector.shape_cast %245 : vector<1x1x1x8x16xf32> to vector<8x16xf32>
    %247 = vector.shape_cast %244 : vector<8x16xf32> to vector<1x1x1x8x16xf32>
    tpu.vector_store %arg10[%c0_435, %c1_436, %c0_437, %c0_438, %c0_439], %247 {strides = array<i32>} : memref<1x8x1x8x16xf32, #tpu.memory_space<vmem>>, vector<1x1x1x8x16xf32>,
    %c0_440 = arith.constant 0 : index
    %c2_441 = arith.constant 2 : index
    %c0_442 = arith.constant 0 : index
    %c0_443 = arith.constant 0 : index
    %c0_444 = arith.constant 0 : index
    %248 = vector.load %arg9[%c0_440, %c2_441, %c0_442, %c0_443, %c0_444] : memref<1x8x1x4x8xf32, #tpu.memory_space<vmem>>, vector<1x1x1x4x8xf32>
    %249 = vector.shape_cast %248 : vector<1x1x1x4x8xf32> to vector<4x8xf32>
    %cst_445 = arith.constant dense<0.000000e+00> : vector<4x16xf32>
    %250 = tpu.matmul %249, %6, %cst_445 {dimension_numbers = #tpu.dot_dimension_numbers<[1], [0], [0], [1], [0, 0, 1, 1], [], []>} : vector<4x8xf32>, vector<8x16xf32>, vector<4x16xf32> -> vector<4x16xf32>
    %cst_446 = arith.constant dense<0.000000e+00> : vector<8x16xf32>
    %251 = tpu.matmul %5, %250, %cst_446 {dimension_numbers = #tpu.dot_dimension_numbers<[1], [0], [0], [1], [0, 0, 1, 1], [], []>} : vector<8x4xf32>, vector<4x16xf32>, vector<8x16xf32> -> vector<8x16xf32>
    %252 = arith.mulf %231, %251 : vector<8x16xf32>
    %c0_447 = arith.constant 0 : index
    %c2_448 = arith.constant 2 : index
    %c0_449 = arith.constant 0 : index
    %c0_450 = arith.constant 0 : index
    %c0_451 = arith.constant 0 : index
    %253 = vector.load %arg10[%c0_447, %c2_448, %c0_449, %c0_450, %c0_451] : memref<1x8x1x8x16xf32, #tpu.memory_space<vmem>>, vector<1x1x1x8x16xf32>
    %254 = vector.shape_cast %253 : vector<1x1x1x8x16xf32> to vector<8x16xf32>
    %255 = vector.shape_cast %252 : vector<8x16xf32> to vector<1x1x1x8x16xf32>
    tpu.vector_store %arg10[%c0_447, %c2_448, %c0_449, %c0_450, %c0_451], %255 {strides = array<i32>} : memref<1x8x1x8x16xf32, #tpu.memory_space<vmem>>, vector<1x1x1x8x16xf32>,
    %c0_452 = arith.constant 0 : index
    %c3_453 = arith.constant 3 : index
    %c0_454 = arith.constant 0 : index
    %c0_455 = arith.constant 0 : index
    %c0_456 = arith.constant 0 : index
    %256 = vector.load %arg9[%c0_452, %c3_453, %c0_454, %c0_455, %c0_456] : memref<1x8x1x4x8xf32, #tpu.memory_space<vmem>>, vector<1x1x1x4x8xf32>
    %257 = vector.shape_cast %256 : vector<1x1x1x4x8xf32> to vector<4x8xf32>
    %cst_457 = arith.constant dense<0.000000e+00> : vector<4x16xf32>
    %258 = tpu.matmul %257, %6, %cst_457 {dimension_numbers = #tpu.dot_dimension_numbers<[1], [0], [0], [1], [0, 0, 1, 1], [], []>} : vector<4x8xf32>, vector<8x16xf32>, vector<4x16xf32> -> vector<4x16xf32>
    %cst_458 = arith.constant dense<0.000000e+00> : vector<8x16xf32>
    %259 = tpu.matmul %5, %258, %cst_458 {dimension_numbers = #tpu.dot_dimension_numbers<[1], [0], [0], [1], [0, 0, 1, 1], [], []>} : vector<8x4xf32>, vector<4x16xf32>, vector<8x16xf32> -> vector<8x16xf32>
    %260 = arith.mulf %231, %259 : vector<8x16xf32>
    %c0_459 = arith.constant 0 : index
    %c3_460 = arith.constant 3 : index
    %c0_461 = arith.constant 0 : index
    %c0_462 = arith.constant 0 : index
    %c0_463 = arith.constant 0 : index
    %261 = vector.load %arg10[%c0_459, %c3_460, %c0_461, %c0_462, %c0_463] : memref<1x8x1x8x16xf32, #tpu.memory_space<vmem>>, vector<1x1x1x8x16xf32>
    %262 = vector.shape_cast %261 : vector<1x1x1x8x16xf32> to vector<8x16xf32>
    %263 = vector.shape_cast %260 : vector<8x16xf32> to vector<1x1x1x8x16xf32>
    tpu.vector_store %arg10[%c0_459, %c3_460, %c0_461, %c0_462, %c0_463], %263 {strides = array<i32>} : memref<1x8x1x8x16xf32, #tpu.memory_space<vmem>>, vector<1x1x1x8x16xf32>,
    %c0_464 = arith.constant 0 : index
    %c4_465 = arith.constant 4 : index
    %c0_466 = arith.constant 0 : index
    %c0_467 = arith.constant 0 : index
    %c0_468 = arith.constant 0 : index
    %264 = vector.load %arg9[%c0_464, %c4_465, %c0_466, %c0_467, %c0_468] : memref<1x8x1x4x8xf32, #tpu.memory_space<vmem>>, vector<1x1x1x4x8xf32>
    %265 = vector.shape_cast %264 : vector<1x1x1x4x8xf32> to vector<4x8xf32>
    %cst_469 = arith.constant dense<0.000000e+00> : vector<4x16xf32>
    %266 = tpu.matmul %265, %6, %cst_469 {dimension_numbers = #tpu.dot_dimension_numbers<[1], [0], [0], [1], [0, 0, 1, 1], [], []>} : vector<4x8xf32>, vector<8x16xf32>, vector<4x16xf32> -> vector<4x16xf32>
    %cst_470 = arith.constant dense<0.000000e+00> : vector<8x16xf32>
    %267 = tpu.matmul %5, %266, %cst_470 {dimension_numbers = #tpu.dot_dimension_numbers<[1], [0], [0], [1], [0, 0, 1, 1], [], []>} : vector<8x4xf32>, vector<4x16xf32>, vector<8x16xf32> -> vector<8x16xf32>
    %268 = arith.mulf %231, %267 : vector<8x16xf32>
    %c0_471 = arith.constant 0 : index
    %c4_472 = arith.constant 4 : index
    %c0_473 = arith.constant 0 : index
    %c0_474 = arith.constant 0 : index
    %c0_475 = arith.constant 0 : index
    %269 = vector.load %arg10[%c0_471, %c4_472, %c0_473, %c0_474, %c0_475] : memref<1x8x1x8x16xf32, #tpu.memory_space<vmem>>, vector<1x1x1x8x16xf32>
    %270 = vector.shape_cast %269 : vector<1x1x1x8x16xf32> to vector<8x16xf32>
    %271 = vector.shape_cast %268 : vector<8x16xf32> to vector<1x1x1x8x16xf32>
    tpu.vector_store %arg10[%c0_471, %c4_472, %c0_473, %c0_474, %c0_475], %271 {strides = array<i32>} : memref<1x8x1x8x16xf32, #tpu.memory_space<vmem>>, vector<1x1x1x8x16xf32>,
    %c0_476 = arith.constant 0 : index
    %c5 = arith.constant 5 : index
    %c0_477 = arith.constant 0 : index
    %c0_478 = arith.constant 0 : index
    %c0_479 = arith.constant 0 : index
    %272 = vector.load %arg9[%c0_476, %c5, %c0_477, %c0_478, %c0_479] : memref<1x8x1x4x8xf32, #tpu.memory_space<vmem>>, vector<1x1x1x4x8xf32>
    %273 = vector.shape_cast %272 : vector<1x1x1x4x8xf32> to vector<4x8xf32>
    %cst_480 = arith.constant dense<0.000000e+00> : vector<4x16xf32>
    %274 = tpu.matmul %273, %6, %cst_480 {dimension_numbers = #tpu.dot_dimension_numbers<[1], [0], [0], [1], [0, 0, 1, 1], [], []>} : vector<4x8xf32>, vector<8x16xf32>, vector<4x16xf32> -> vector<4x16xf32>
    %cst_481 = arith.constant dense<0.000000e+00> : vector<8x16xf32>
    %275 = tpu.matmul %5, %274, %cst_481 {dimension_numbers = #tpu.dot_dimension_numbers<[1], [0], [0], [1], [0, 0, 1, 1], [], []>} : vector<8x4xf32>, vector<4x16xf32>, vector<8x16xf32> -> vector<8x16xf32>
    %276 = arith.mulf %231, %275 : vector<8x16xf32>
    %c0_482 = arith.constant 0 : index
    %c5_483 = arith.constant 5 : index
    %c0_484 = arith.constant 0 : index
    %c0_485 = arith.constant 0 : index
    %c0_486 = arith.constant 0 : index
    %277 = vector.load %arg10[%c0_482, %c5_483, %c0_484, %c0_485, %c0_486] : memref<1x8x1x8x16xf32, #tpu.memory_space<vmem>>, vector<1x1x1x8x16xf32>
    %278 = vector.shape_cast %277 : vector<1x1x1x8x16xf32> to vector<8x16xf32>
    %279 = vector.shape_cast %276 : vector<8x16xf32> to vector<1x1x1x8x16xf32>
    tpu.vector_store %arg10[%c0_482, %c5_483, %c0_484, %c0_485, %c0_486], %279 {strides = array<i32>} : memref<1x8x1x8x16xf32, #tpu.memory_space<vmem>>, vector<1x1x1x8x16xf32>,
    %c0_487 = arith.constant 0 : index
    %c6 = arith.constant 6 : index
    %c0_488 = arith.constant 0 : index
    %c0_489 = arith.constant 0 : index
    %c0_490 = arith.constant 0 : index
    %280 = vector.load %arg9[%c0_487, %c6, %c0_488, %c0_489, %c0_490] : memref<1x8x1x4x8xf32, #tpu.memory_space<vmem>>, vector<1x1x1x4x8xf32>
    %281 = vector.shape_cast %280 : vector<1x1x1x4x8xf32> to vector<4x8xf32>
    %cst_491 = arith.constant dense<0.000000e+00> : vector<4x16xf32>
    %282 = tpu.matmul %281, %6, %cst_491 {dimension_numbers = #tpu.dot_dimension_numbers<[1], [0], [0], [1], [0, 0, 1, 1], [], []>} : vector<4x8xf32>, vector<8x16xf32>, vector<4x16xf32> -> vector<4x16xf32>
    %cst_492 = arith.constant dense<0.000000e+00> : vector<8x16xf32>
    %283 = tpu.matmul %5, %282, %cst_492 {dimension_numbers = #tpu.dot_dimension_numbers<[1], [0], [0], [1], [0, 0, 1, 1], [], []>} : vector<8x4xf32>, vector<4x16xf32>, vector<8x16xf32> -> vector<8x16xf32>
    %284 = arith.mulf %231, %283 : vector<8x16xf32>
    %c0_493 = arith.constant 0 : index
    %c6_494 = arith.constant 6 : index
    %c0_495 = arith.constant 0 : index
    %c0_496 = arith.constant 0 : index
    %c0_497 = arith.constant 0 : index
    %285 = vector.load %arg10[%c0_493, %c6_494, %c0_495, %c0_496, %c0_497] : memref<1x8x1x8x16xf32, #tpu.memory_space<vmem>>, vector<1x1x1x8x16xf32>
    %286 = vector.shape_cast %285 : vector<1x1x1x8x16xf32> to vector<8x16xf32>
    %287 = vector.shape_cast %284 : vector<8x16xf32> to vector<1x1x1x8x16xf32>
    tpu.vector_store %arg10[%c0_493, %c6_494, %c0_495, %c0_496, %c0_497], %287 {strides = array<i32>} : memref<1x8x1x8x16xf32, #tpu.memory_space<vmem>>, vector<1x1x1x8x16xf32>,
    %c0_498 = arith.constant 0 : index
    %c7 = arith.constant 7 : index
    %c0_499 = arith.constant 0 : index
    %c0_500 = arith.constant 0 : index
    %c0_501 = arith.constant 0 : index
    %288 = vector.load %arg9[%c0_498, %c7, %c0_499, %c0_500, %c0_501] : memref<1x8x1x4x8xf32, #tpu.memory_space<vmem>>, vector<1x1x1x4x8xf32>
    %289 = vector.shape_cast %288 : vector<1x1x1x4x8xf32> to vector<4x8xf32>
    %cst_502 = arith.constant dense<0.000000e+00> : vector<4x16xf32>
    %290 = tpu.matmul %289, %6, %cst_502 {dimension_numbers = #tpu.dot_dimension_numbers<[1], [0], [0], [1], [0, 0, 1, 1], [], []>} : vector<4x8xf32>, vector<8x16xf32>, vector<4x16xf32> -> vector<4x16xf32>
    %cst_503 = arith.constant dense<0.000000e+00> : vector<8x16xf32>
    %291 = tpu.matmul %5, %290, %cst_503 {dimension_numbers = #tpu.dot_dimension_numbers<[1], [0], [0], [1], [0, 0, 1, 1], [], []>} : vector<8x4xf32>, vector<4x16xf32>, vector<8x16xf32> -> vector<8x16xf32>
    %292 = arith.mulf %231, %291 : vector<8x16xf32>
    %c0_504 = arith.constant 0 : index
    %c7_505 = arith.constant 7 : index
    %c0_506 = arith.constant 0 : index
    %c0_507 = arith.constant 0 : index
    %c0_508 = arith.constant 0 : index
    %293 = vector.load %arg10[%c0_504, %c7_505, %c0_506, %c0_507, %c0_508] : memref<1x8x1x8x16xf32, #tpu.memory_space<vmem>>, vector<1x1x1x8x16xf32>
    %294 = vector.shape_cast %293 : vector<1x1x1x8x16xf32> to vector<8x16xf32>
    %295 = vector.shape_cast %292 : vector<8x16xf32> to vector<1x1x1x8x16xf32>
    tpu.vector_store %arg10[%c0_504, %c7_505, %c0_506, %c0_507, %c0_508], %295 {strides = array<i32>} : memref<1x8x1x8x16xf32, #tpu.memory_space<vmem>>, vector<1x1x1x8x16xf32>,
    return
  }
  func.func @transform_0(%arg0: i32, %arg1: i32) -> (i32, i32, i32, i32, i32, i32) {
    %c0_i32 = arith.constant 0 : i32
    %c0_i32_0 = arith.constant 0 : i32
    %c0_i32_1 = arith.constant 0 : i32
    %c0_i32_2 = arith.constant 0 : i32
    %c0_i32_3 = arith.constant 0 : i32
    return %arg0, %arg1, %c0_i32, %c0_i32_0, %c0_i32_1, %c0_i32_2 : i32, i32, i32, i32, i32, i32
  }
  func.func @transform_1(%arg0: i32, %arg1: i32) -> (i32, i32) {
    %c0_i32 = arith.constant 0 : i32
    %c0_i32_0 = arith.constant 0 : i32
    %c0_i32_1 = arith.constant 0 : i32
    return %c0_i32, %c0_i32_0 : i32, i32
  }
  func.func @transform_2(%arg0: i32, %arg1: i32) -> (i32, i32) {
    %c0_i32 = arith.constant 0 : i32
    %c0_i32_0 = arith.constant 0 : i32
    %c0_i32_1 = arith.constant 0 : i32
    return %c0_i32, %c0_i32_0 : i32, i32
  }
  func.func @transform_3(%arg0: i32, %arg1: i32) -> (i32, i32) {
    %c0_i32 = arith.constant 0 : i32
    %c0_i32_0 = arith.constant 0 : i32
    %c0_i32_1 = arith.constant 0 : i32
    return %c0_i32, %c0_i32_0 : i32, i32
  }
  func.func @transform_4(%arg0: i32, %arg1: i32) -> (i32, i32) {
    %c0_i32 = arith.constant 0 : i32
    %c0_i32_0 = arith.constant 0 : i32
    %c0_i32_1 = arith.constant 0 : i32
    return %c0_i32, %c0_i32_0 : i32, i32
  }
  func.func @transform_5(%arg0: i32, %arg1: i32) -> (i32, i32) {
    %c0_i32 = arith.constant 0 : i32
    %c0_i32_0 = arith.constant 0 : i32
    %c0_i32_1 = arith.constant 0 : i32
    return %c0_i32, %c0_i32_0 : i32, i32
  }
  func.func @transform_6(%arg0: i32, %arg1: i32) -> (i32, i32) {
    %c0_i32 = arith.constant 0 : i32
    %c0_i32_0 = arith.constant 0 : i32
    %c0_i32_1 = arith.constant 0 : i32
    return %c0_i32, %c0_i32_0 : i32, i32
  }
  func.func @transform_7(%arg0: i32, %arg1: i32) -> (i32, i32, i32, i32, i32) {
    %c0_i32 = arith.constant 0 : i32
    %c0_i32_0 = arith.constant 0 : i32
    %c0_i32_1 = arith.constant 0 : i32
    %c0_i32_2 = arith.constant 0 : i32
    return %arg0, %c0_i32, %arg1, %c0_i32_0, %c0_i32_1 : i32, i32, i32, i32, i32
  }
  func.func @transform_8(%arg0: i32, %arg1: i32) -> (i32, i32, i32, i32, i32) {
    %c0_i32 = arith.constant 0 : i32
    %c0_i32_0 = arith.constant 0 : i32
    %c0_i32_1 = arith.constant 0 : i32
    %c0_i32_2 = arith.constant 0 : i32
    return %arg0, %c0_i32, %arg1, %c0_i32_0, %c0_i32_1 : i32, i32, i32, i32, i32
  }
}

</mosaic_0001>

<bundles_post_ra>
// kernel: indexup_forward.1
= control target key start
LH: loop header
LB: loop body
LE: loop exit
PB: predicated region body
PF: predicated region fallthrough
CT: control target
= control target key end

     0   :  { %13 = vsyncpa [#allocation4], 0  ;;  %s4123_s0 = inlined_call_operand.vmem [shape: f32[2,2,4,5,8,9], index: 0, kind: input, shape index: {}]   ;;  %s4124_s1 = inlined_call_operand.vmem [shape: f32[16,128], index: 1, kind: input, shape index: {}]   ;;  %s4125_s2 = inlined_call_operand.vmem [shape: f32[16,1], index: 2, kind: input, shape index: {}]   ;;  %s4126_s3 = inlined_call_operand.vmem [shape: f32[4,16], index: 3, kind: input, shape index: {}]   ;;  %s4127_s4 = inlined_call_operand.vmem [shape: f32[8,16], index: 4, kind: input, shape index: {}]   ;;  %s4128_s5 = inlined_call_operand.vmem [shape: f32[8,16], index: 5, kind: input, shape index: {}]   ;;  %s4129_s6 = inlined_call_operand.vmem [shape: f32[8,4], index: 6, kind: input, shape index: {}]   ;;  %s4130_s7 = inlined_call_operand.vmem [shape: f32[2,8,2,4,8], index: 7, kind: input, shape index: {}]   ;;  %s4131_s8 = inlined_call_operand.hbm [shape: f32[2,8,2,8,16], index: 8, kind: output, shape index: {}]  }
   0x1   :  { %15 = vsyncpa [#allocation4 + $0x1], 0  ;;  %s3654_s27 = smov 0   ;;  %s3656_s28 = smov 0  }
   0x2   :  { %s3658_s29 = smov 0   ;;  %s3660_s30 = smov 0  }
   0x3   :  { %s3662_s9 = smov 0   ;;  %s3664_s10 = smov 0  }
   0x4   :  { %s3666_s11 = smov 0   ;;  %s3668_s12 = smov 0  }
   0x5 LB: > { %s2732_s13 = sadd.s32 4294967295, %s3598_s12   ;;  %s2733_s14 = sadd.s32 4294967294, %s3598_s12   ;;  %s3598_s12 = sphi %s3668_s12, %s21_s12   ;;  %s3594_s11 = sphi %s3666_s11, %s4147_s11   ;;  %s3590_s10 = sphi %s3664_s10, %s4146_s10   ;;  %s3586_s9 = sphi %s3662_s9, %s4145_s9   ;;  %s3582_s30 = sphi %s3660_s30, %s4144_s30   ;;  %s3578_s29 = sphi %s3658_s29, %s4143_s29   ;;  %s3574_s28 = sphi %s3656_s28, %s4142_s28   ;;  %s3570_s27 = sphi %s3654_s27, %s4141_s27  }
   0x6   : > { %s30_s15 = sadd.s32 1, %s3590_s10  ;;  %s33_s16 = sadd.s32 1, %s3594_s11 }
   0x7   : > { %p31_p0 = scmp.ge.s32.totalorder %s30_s15, 2  ;;  %p203_p1 = scmp.ne.s32.totalorder %s3578_s29, %s3574_s28 }
   0x8   : > { %p204_p2 = scmp.eq.s32.totalorder %s3598_s12, 0  ;;  %p235_p5 = scmp.eq.s32.totalorder %s2732_s13, 3 }
   0x9   : > { %s4149_s15 = smov (%p31_p0, %s30_s15), 0  ;;  %s4151_s16 = smov (!%p31_p0, %s33_s16), %s3594_s11 }
   0xa   : > { %4134 = sst [smem:[#allocation6_spill]] %s4149_s15  ;;  %s192_s17 = ssub.s32 %s3590_s10, %s4149_s15 }
   0xb   : > { %p3706_p3 = por %p204_p2, %p203_p1  ;;  %p35_p4 = scmp.ge.s32.totalorder %s4151_s16, 2 }
   0xc   : > { %p240_p6 = scmp.ne.s32.totalorder %s3574_s28, %s3570_s27  ;;  %p241_p7 = scmp.eq.s32.totalorder %s2733_s14, 3 }
   0xd   : > { %s4153_s16 = smov (%p35_p4, %s4151_s16), 0  ;;  %p3714_p8 = por %p235_p5, %p203_p1 }
   0xe   : > { %4136 = sst [smem:[#allocation7_spill]] %s4153_s16  ;;  %p3718_p9 = por %p241_p7, %p240_p6 }
   0xf   : > { %s191_s21 = ssub.s32 %s3594_s11, %s4153_s16  ;;  %s196_s23 = sadd.s32 1, %s3578_s29 }
  0x10   : > { %s193_s22 = sor.u32 %s192_s17, %s191_s21  ;;  %p2735_p11 = scmp.ge.s32.totalorder %s3598_s12, 4 }
  0x11   : > { %p194_p10 = scmp.eq.s32.totalorder %s193_s22, 0 }
  0x12   : > { %275 = sbr.rel (%p2735_p11) target bundleno = 36 (0x24), region = 40 }
  0x13   : > { %s3726_s24 = scalar_select %p194_p10, %s3578_s29, %s196_s23  }
  0x19   : > { %290 = sbr.rel (!%p3706_p3) target bundleno = 36 (0x24), region = 48  ;;  %s292_s25 = sand.u32 (%p3706_p3), 1, %s3578_s29  }
  0x1a   : > { %s2737_s26 = sshll.u32 (%p3706_p3), %s3594_s11, 4  ;;  %s2736_s13 = sshll.u32 (%p3706_p3), %s292_s25, 5 }
  0x1b   : > { %s296_s14 = sadd.s32 (%p3706_p3), %s3590_s10, %s2737_s26  ;;  %s294_s22 = scalar_lea.vmem (%p3706_p3), [#allocation2], %s2736_s13 }
  0x1c   : > { %s2738_s15 = sshll.u32 (%p3706_p3), %s296_s14, 2 }
  0x1d   : > { %s298_s21 = scalar_lea.vmem (%p3706_p3), %s4130_s7, %s2738_s15 }
  0x1e   : > { %v314_v0 = vld [vmem:[%s298_s21] sm:$0xf] (%p3706_p3)  ;;  %v316_v1 = vld [vmem:[%s298_s21 + $0x8] sm:$0xf] (%p3706_p3)  ;;  %v318_v2 = vld [vmem:[%s298_s21 + $0x10] sm:$0xf] (%p3706_p3) }
  0x1f   : > { %315 = vst [vmem:[%s294_s22] sm:$0xf] (%p3706_p3), %v314_v0  ;;  %317 = vst [vmem:[%s294_s22 + $0x4] sm:$0xf] (%p3706_p3), %v316_v1  ;;  %v320_v3 = vld [vmem:[%s298_s21 + $0x18] sm:$0xf] (%p3706_p3) }
  0x20   : > { %319 = vst [vmem:[%s294_s22 + $0x8] sm:$0xf] %v318_v2  ;;  %v322_v4 = vld [vmem:[%s298_s21 + $0x20] sm:$0xf]  ;;  %v324_v5 = vld [vmem:[%s298_s21 + $0x28] sm:$0xf] }
  0x21   : > { %321 = vst [vmem:[%s294_s22 + $0xc] sm:$0xf] %v320_v3  ;;  %323 = vst [vmem:[%s294_s22 + $0x10] sm:$0xf] %v322_v4  ;;  %v326_v6 = vld [vmem:[%s298_s21 + $0x30] sm:$0xf] }
  0x22   : > { %325 = vst [vmem:[%s294_s22 + $0x14] sm:$0xf] %v324_v5  ;;  %v328_v7 = vld [vmem:[%s298_s21 + $0x38] sm:$0xf]  ;;  %327 = vst [vmem:[%s294_s22 + $0x18] sm:$0xf] %v326_v6 }
  0x23   : > { %329 = vst [vmem:[%s294_s22 + $0x1c] sm:$0xf] %v328_v7 }
  0x24 PF: > { %p2739_p12 = scmp.ge.s32.totalorder %s3598_s12, 1  ;;  %p367_p13 = scmp.lt.s32.totalorder %s3598_s12, 5 }
  0x26   : > { %p368_p0 = pnand %p2739_p12, %p367_p13 }
  0x27   : > { %p416_p1 = scmp.lt.s32.totalorder (!%p368_p0), %s3586_s9, 1  ;;  %p418_p2 = scmp.lt.s32.totalorder (!%p368_p0), %s3582_s30, 1  ;;  %v3767_v24 = vld [vmem:[%s4124_s1] sm:$0xff] (!%p368_p0)  ;;  %v428_v25 = vld [vmem:[%s4125_s2 + $0x8] sm:$0xff] (!%p368_p0)  ;;  %v3601_v28 = vmov (!%p368_p0), 0   ;;  %v3602_v53 = vmov (!%p368_p0), 0.0|0.0  }
  0x28   : > { %371 = sbr.rel (%p368_p0) target bundleno = 1944 (0x798), region = 89  ;;  %s3600_s21 = smov (!%p368_p0), 127   ;;  %2971 = vmatprep.mubr.f32.mxu0 (!%p368_p0), %v3767_v24  ;;  %v427_v26 = vld [vmem:[%s4125_s2] sm:$0xff] (!%p368_p0)  ;;  %3441 = vset.pattern.permute.xlu1 (!%p368_p0), %v3601_v28  ;;  %v3793_v52 = vld [vmem:[%s4124_s1 + $0x8] sm:$0xff] (!%p368_p0)  ;;  %vm3603_vm0 = vmmov (!%p368_p0), 0   ;;  %v3604_v54 = vmov (!%p368_p0), 0.0  }
  0x29   : > { %3440 = vset.pattern.permute.xlu0 (!%p368_p0), %v3601_v28  ;;  %3229 = vmatprep.subr.bf16.mxu1 (!%p368_p0), %v3602_v53  ;;  %vm570_vm1 = vcmask (!%p368_p0), 130048   ;;  %vm1229_vm2 = vcmask (!%p368_p0), 1040384   ;;  %vm1231_vm3 = vcmask (!%p368_p0), 1041408   ;;  %vm1233_vm4 = vcmask (!%p368_p0), 1042432   ;;  %s3605_s13 = smov (!%p368_p0), [#allocation3]  }
  0x2a   : > { %2978 = vmatprep.mubr.msk.f32.mxu1 (!%p368_p0), %vm3603_vm0, %v3604_v54  ;;  %vm1256_vm5 = vcmask (!%p368_p0), 64512   ;;  %vm1235_vm6 = vcmask (!%p368_p0), 1043456   ;;  %vm1237_vm7 = vcmask (!%p368_p0), 1044480   ;;  %vm1477_vm8 = vcmask (!%p368_p0), 31744  }
  0x2b   : > { %vm1239_vm9 = vcmask (!%p368_p0), 1045504   ;;  %vm1241_vm10 = vcmask (!%p368_p0), 1046528  }
  0x2f   : > { %s417_s15 = scalar_select %p416_p1, %s3586_s9, 1 }
  0x30   : > { %s419_s16 = scalar_select %p418_p2, %s3582_s30, 1 }
  0x31   : > { %s3340_s18 = smul.u32 40, %s417_s15 }
  0x32   : > { %s3339_s23 = smul.u32 20, %s419_s16 }
  0x34   : > { %s422_s25 = sadd.s32 %s3340_s18, %s3339_s23  ;;  %s3909_s18 = sand.u32 1, %s3574_s28  }
  0x35   : > { %s2742_s26 = sshll.u32 %s422_s25, 3  ;;  %s2740_s23 = sshll.u32 %s3909_s18, 5 }
  0x36   : > { %s3746_s17 = scalar_lea.vmem %s4123_s0, %s2742_s26  ;;  %s3916_s25 = scalar_lea.vmem [#allocation2], %s2740_s23 }
  0x37   : > { %v434_v8 = vld [vmem:[%s3746_s17] sm:$0xff]  ;;  %v2743_v9 = vld [vmem:[%s3746_s17 + $0x28] sm:$0xff]  ;;  %v2744_v10 = vld [vmem:[%s3746_s17 + $0x50] sm:$0xff]  ;;  %s2741_s14 = sshll.u32 %s3909_s18, 6 }
  0x38   : > { %v3420_v11 = vpack.i.bf16 %v2743_v9, %v434_v8  ;;  %v2745_v12 = vld [vmem:[%s3746_s17 + $0x78] sm:$0xff]  ;;  %v2746_v13 = vld [vmem:[%s3746_s17 + $0x8] sm:$0xff]  ;;  %v2747_v14 = vld [vmem:[%s3746_s17 + $0x30] sm:$0xff]  ;;  %v3197_v15 = vpack.c.bf16 %v2743_v9, %v434_v8  ;;  %s3997_s22 = scalar_lea.vmem [#allocation3], %s2741_s14  ;;  %s3508_s14 = sshll.u32 %s3605_s13, 4  ;;  %s3509_s14 = int_to_ptr.vmem [resolvable:$false] %s3508_s14 }
  0x39   : > { %v3430_v16 = vpack.i.bf16 %v2747_v14, %v2746_v13  ;;  %v3754_v17 = vpack.c.bf16 %v2747_v14, %v2746_v13  ;;  %v2748_v18 = vld [vmem:[%s3746_s17 + $0x58] sm:$0xff]  ;;  %v2749_v19 = vld [vmem:[%s3746_s17 + $0x80] sm:$0xff]  ;;  %v3205_v20 = vpack.c.bf16 %v2745_v12, %v2744_v10  ;;  %v3425_v21 = vpack.i.bf16 %v2745_v12, %v2744_v10  ;;  %v2753_v27 = vld [vmem:[%s3746_s17 + $0x10] sm:$0xff]  ;;  %s2628_s15 = sshll.u32 %s3997_s22, 4  ;;  %s4059_s15 = int_to_ptr.vmem [resolvable:$true] %s2628_s15 }
  0x3a   : > { %3421 = vrot.lane.b32.xlu0 %v3420_v11, %s3600_s21  ;;  %v3759_v22 = vpack.c.bf16 %v2749_v19, %v2748_v18  ;;  %3198 = vmatprep.subr.bf16.mxu0 %v3197_v15  ;;  %v3435_v23 = vpack.i.bf16 %v2749_v19, %v2748_v18  ;;  %v2754_v29 = vld [vmem:[%s3746_s17 + $0x38] sm:$0xff]  ;;  %v2755_v30 = vld [vmem:[%s3746_s17 + $0x60] sm:$0xff]  ;;  %v2756_v31 = vld [vmem:[%s3746_s17 + $0x88] sm:$0xff]  ;;  %s3504_s26 = scalar_lea.vmem %s4059_s15, 1024  ;;  %p3511_p6 = scmp.lt.s32.totalorder %s4059_s15, %s3509_s14 }
  0x3b   : > { %3431 = vrot.lane.b32.xlu1 %v3430_v16, %s3600_s21  ;;  %3200 = vmatpush3.bf16.msra.mxu0 %v3197_v15  ;;  %v3442_v32 = vpack.i.bf16 %v2754_v29, %v2753_v27  ;;  %v3780_v33 = vpack.c.bf16 %v2754_v29, %v2753_v27  ;;  %v3447_v34 = vpack.i.bf16 %v2756_v31, %v2755_v30  ;;  %v2760_v55 = vld [vmem:[%s3746_s17 + $0x18] sm:$0xff]  ;;  %v2761_v56 = vld [vmem:[%s3746_s17 + $0x40] sm:$0xff]  ;;  %v2762_v57 = vld [vmem:[%s3746_s17 + $0x68] sm:$0xff]  ;;  %p3505_p3 = scmp.ne.s32.totalorder %s4059_s15, %s3504_s26 }
  0x3c   : > { %v3782_v35 = vpack.c.bf16 %v2756_v31, %v2755_v30  ;;  %v3452_v58 = vpack.i.bf16 %v2761_v56, %v2760_v55  ;;  %v3805_v59 = vpack.c.bf16 %v2761_v56, %v2760_v55  ;;  %v2763_v60 = vld [vmem:[%s3746_s17 + $0x90] sm:$0xff]  ;;  %v3821_v10 = vld [vmem:[%s4126_s3] sm:$0xf] }
  0x3d   : > { %v3457_v61 = vpack.i.bf16 %v2763_v60, %v2762_v57  ;;  %v3808_v62 = vpack.c.bf16 %v2763_v60, %v2762_v57  ;;  %v3839_v19 = vld [vmem:[%s3746_s17 + $0x20] sm:$0xff]  ;;  %p3506_p4 = pnand %p3505_p3, %p3714_p8 }
  0x3e   : > { %3426 = vrot.lane.b32.xlu0 %v3425_v21, %s3600_s21  ;;  %v3845_v21 = vld [vmem:[%s3746_s17 + $0x70] sm:$0xff] }
  0x3f   : > { %3436 = vrot.lane.b32.xlu1 %v3435_v23, %s3600_s21  ;;  %v3850_v23 = vld [vmem:[%s3746_s17 + $0x98] sm:$0xff]  ;;  %p3507_p5 = pneg %p3506_p4 }
  0x42   : > { %483 = vperm.xlu0 %3440, %v427_v26  }
  0x43   : > { %488 = vperm.xlu1 %3441, %v428_v25   ;;  %v3467_v25 = vpack.i.bf16 %v3850_v23, %v3845_v21 }
  0x46   : > { %3448 = vrot.lane.b32.xlu0 %v3447_v34, %s3600_s21 }
  0x47   : > { %3443 = vrot.lane.b32.xlu1 %v3442_v32, %s3600_s21 }
  0x4a   : > { %3458 = vrot.lane.b32.xlu0 %v3457_v61, %s3600_s21 }
  0x4b   : > { %3453 = vrot.lane.b32.xlu1 %v3452_v58, %s3600_s21 }
  0x4e   : > { %3468 = vrot.lane.b32.xlu0 %v3467_v25, %s3600_s21 }
  0xac   : > { %v3422_v36 = vpop.permute.xlu0 %3421 }
  0xad   : > { %v3424_v37 = vunpack.i.h.bf16 %v3422_v36  ;;  %v3423_v38 = vunpack.i.l.bf16 %v3422_v36  ;;  %v3432_v44 = vpop.permute.xlu1 %3431 }
  0xae   : > { %v3434_v45 = vunpack.i.h.bf16 %v3432_v44  ;;  %v3433_v46 = vunpack.i.l.bf16 %v3432_v44 }
  0xaf   : > { %v3201_v39 = vpack.c.bf16 %v3424_v37, %v3423_v38 }
  0xb0   : > { %v3427_v40 = vpop.permute.xlu0 %3426  ;;  %v3217_v47 = vpack.c.bf16 %v3434_v45, %v3433_v46 }
  0xb1   : > { %3202 = vmatprep.subr.bf16.mxu0 %v3201_v39  ;;  %v3429_v41 = vunpack.i.h.bf16 %v3427_v40  ;;  %v3428_v42 = vunpack.i.l.bf16 %v3427_v40  ;;  %v3437_v48 = vpop.permute.xlu1 %3436 }
  0xb2   : > { %3204 = vmatpush3.bf16.msra.mxu0 %v3201_v39  ;;  %v3439_v49 = vunpack.i.h.bf16 %v3437_v48  ;;  %v3438_v50 = vunpack.i.l.bf16 %v3437_v48 }
  0xb3   : > { %v3209_v43 = vpack.c.bf16 %v3429_v41, %v3428_v42  ;;  %3206 = vmatprep.subr.bf16.mxu0 %v3205_v20 }
  0xb4   : > { %v3225_v51 = vpack.c.bf16 %v3439_v49, %v3438_v50 }
  0xb6   : > { %3208 = vmatpush3.bf16.msra.mxu0 %v3205_v20  ;;  %v3842_v20 = vld [vmem:[%s3746_s17 + $0x48] sm:$0xff]  ;;  %s2815_s17 = sshll.u32 %s3586_s9, 4 }
  0xb7   : > { %3210 = vmatprep.subr.bf16.mxu0 %v3209_v43 }
  0xba   : > { %3212 = vmatpush3.bf16.msra.mxu0 %v3209_v43 }
  0xbb   : > { %3214 = vmatprep.subr.bf16.mxu0 %v3754_v17 }
  0xbe   : > { %3216 = vmatpush3.bf16.msra.mxu0 %v3754_v17 }
  0xbf   : > { %3218 = vmatprep.subr.bf16.mxu0 %v3217_v47 }
  0xc1   : > { %v3814_v0 = vpop.permute.xlu0 %483 }
  0xc2   : > { %3220 = vmatpush3.bf16.msra.mxu0 %v3217_v47  ;;  %v3812_v63 = vpop.permute.xlu1 %488 }
  0xc3   : > { %3222 = vmatprep.subr.bf16.mxu0 %v3759_v22 }
  0xc5   : > { %v3449_v15 = vpop.permute.xlu0 %3448 }
  0xc6   : > { %3224 = vmatpush3.bf16.msra.mxu0 %v3759_v22  ;;  %v3444_v11 = vpop.permute.xlu1 %3443  ;;  %v3451_v16 = vunpack.i.h.bf16 %v3449_v15 }
  0xc7   : > { %3226 = vmatprep.subr.bf16.mxu0 %v3225_v51  ;;  %v3446_v12 = vunpack.i.h.bf16 %v3444_v11  ;;  %v3445_v13 = vunpack.i.l.bf16 %v3444_v11 }
  0xc9   : > { %v3252_v14 = vpack.c.bf16 %v3446_v12, %v3445_v13  ;;  %v3459_v43 = vpop.permute.xlu0 %3458 }
  0xca   : > { %3228 = vmatpush3.bf16.msra.mxu0 %v3225_v51  ;;  %v3454_v39 = vpop.permute.xlu1 %3453  ;;  %v3460_v44 = vunpack.i.l.bf16 %v3459_v43 }
  0xcb   : > { %3264 = vmatprep.subr.bf16.mxu0 %v3602_v53  ;;  %v3456_v40 = vunpack.i.h.bf16 %v3454_v39  ;;  %v3455_v41 = vunpack.i.l.bf16 %v3454_v39 }
  0xcd   : > { %2972 = vmatmul.mubr.f32.vlgmr.msra.gmra.mrb[0].mxu0 %v3793_v52  ;;  %v3287_v42 = vpack.c.bf16 %v3456_v40, %v3455_v41 }
  0xce   : > { %3020 = vmatprep.mubr.msk.f32.mxu0 %vm3603_vm0, %v3604_v54 }
 0x1a0   : > { %v2973_v1 = vpop.f32.mrb[0].mxu0 }
 0x1a1   : > { %v563_v2 = vadd.f32 %v2973_v1, %v3812_v63  ;;  %v557_v3 = vpop.f32.mrb[1].mxu0 }
 0x1a2   : > { %v558_v4 = vadd.f32 %v557_v3, %v3814_v0 }
 0x1a3   : > { %v567_v5 = vmax.f32 %v563_v2, 0.0 }
 0x1a4   : > { %v566_v6 = vmax.f32 %v558_v4, 0.0 }
 0x1a5   : > { %v569_v7 = vmin.f32 %v567_v5, 6.0 }
 0x1a6   : > { %v568_v8 = vmin.f32 %v566_v6, 6.0 }
 0x1a8   : > { %v3230_v9 = vpack.c.bf16 %v569_v7, %v568_v8 }
 0x1aa   : > { %3231 = vmatpush3.bf16.msra.mxu1 %v3230_v9 }
 0x1ab   : > { %3233 = vmatprep.subr.bf16.mxu1 %v3754_v17 }
 0x1ad   : > { %2979 = vmatmul.mubr.msk.f32.vlgmr.msra.gmra.mrb[0].mxu1 %vm570_vm1, %v3821_v10 }
 0x1ae   : > { %3235 = vmatpush3.bf16.msra.mxu1 %v3754_v17  ;;  %3013 = vmatprep.mubr.f32.mxu1 %v3767_v24  ;;  %v3450_v17 = vunpack.i.l.bf16 %v3449_v15 }
 0x1af   : > { %3237 = vmatprep.subr.bf16.mxu1 %v3217_v47 }
 0x1b0   : > { %v3260_v18 = vpack.c.bf16 %v3451_v16, %v3450_v17 }
 0x1b2   : > { %3239 = vmatpush3.bf16.msra.mxu1 %v3217_v47 }
 0x1b3   : > { %3241 = vmatprep.subr.bf16.mxu1 %v3759_v22 }
 0x1b6   : > { %3243 = vmatpush3.bf16.msra.mxu1 %v3759_v22  ;;  %v3462_v22 = vpack.i.bf16 %v3842_v20, %v3839_v19 }
 0x1b7   : > { %3245 = vmatprep.subr.bf16.mxu1 %v3225_v51 }
 0x1b8   : > { %3463 = vrot.lane.b32.xlu1 %v3462_v22, %s3600_s21  ;;  %s2625_s21 = sadd.s32 %s3582_s30, %s2815_s17  ;;  %s3510_s17 = scalar_lea.vmem %s3509_s14, 2048 }
 0x1b9   : > { %s2816_s16 = sshll.u32 %s2625_s21, 7  ;;  %p3512_p7 = scmp.lt.s32.totalorder %s3510_s17, %s3504_s26 }
 0x1ba   : > { %3247 = vmatpush3.bf16.msra.mxu1 %v3225_v51  ;;  %s4066_s30 = scalar_lea.hbm %s4131_s8, %s2816_s16 }
 0x1bb   : > { %3249 = vmatprep.subr.bf16.mxu1 %v3780_v33  ;;  %p3513_p10 = por %p3512_p7, %p3511_p6 }
 0x1bd   : > { %p3514_p11 = pnand %p3513_p10, %p3507_p5 }
 0x1be   : > { %3251 = vmatpush3.bf16.msra.mxu1 %v3780_v33 }
 0x1bf   : > { %3253 = vmatprep.subr.bf16.mxu1 %v3252_v14 }
 0x1c2   : > { %3255 = vmatpush3.bf16.msra.mxu1 %v3252_v14 }
 0x1c3   : > { %3257 = vmatprep.subr.bf16.mxu1 %v3782_v35 }
 0x1c6   : > { %3259 = vmatpush3.bf16.msra.mxu1 %v3782_v35 }
 0x1c7   : > { %3261 = vmatprep.subr.bf16.mxu1 %v3260_v18 }
 0x1ca   : > { %3263 = vmatpush3.bf16.msra.mxu1 %v3260_v18 }
 0x1cb   : > { %3299 = vmatprep.subr.bf16.mxu1 %v3602_v53 }
 0x1cd   : > { %3014 = vmatmul.mubr.f32.vlgmr.msra.gmra.mrb[2].mxu1 %v3793_v52 }
 0x1ce   : > { %3062 = vmatprep.mubr.msk.f32.mxu1 %vm3603_vm0, %v3604_v54 }
 0x22a   : > { %v3464_v17 = vpop.permute.xlu1 %3463 }
 0x280   : > { %v640_v26 = vpop.f32.mrb[0].mxu1 }
 0x281   : > { %v2980_v27 = vpop.f32.mrb[1].mxu1 }
 0x282   : > { %v3465_v27 = vunpack.i.l.bf16 %v3464_v17 }
 0x2a0   : > { %v3015_v28 = vpop.f32.mrb[2].mxu1 }
 0x2a1   : > { %v752_v29 = vadd.f32 %v3015_v28, %v3812_v63  ;;  %v746_v30 = vpop.f32.mrb[3].mxu1 }
 0x2a2   : > { %v747_v31 = vadd.f32 %v746_v30, %v3814_v0 }
 0x2a3   : > { %v756_v32 = vmax.f32 %v752_v29, 0.0 }
 0x2a4   : > { %v755_v34 = vmax.f32 %v747_v31, 0.0 }
 0x2a5   : > { %v758_v36 = vmin.f32 %v756_v32, 6.0 }
 0x2a6   : > { %v757_v37 = vmin.f32 %v755_v34, 6.0  ;;  %v3326_v34 = vpack.c.bf16 %v3850_v23, %v3845_v21  ;;  %v431_v21 = vld [vmem:[%s4128_s5] sm:$0xff] }
 0x2a8   : > { %v3265_v38 = vpack.c.bf16 %v758_v36, %v757_v37  ;;  %v3903_v37 = vld [vmem:[%s4127_s4] sm:$0xff] }
 0x2a9   : > { %v3912_v23 = vadd.f32 %v431_v21, %v3903_v37 }
 0x2aa   : > { %3266 = vmatpush3.bf16.msra.mxu0 %v3265_v38 }
 0x2ab   : > { %3268 = vmatprep.subr.bf16.mxu0 %v3780_v33 }
 0x2ad   : > { %3021 = vmatmul.mubr.msk.f32.vlgmr.msra.gmra.mrb[2].mxu0 %vm570_vm1, %v3821_v10 }
 0x2ae   : > { %3270 = vmatpush3.bf16.msra.mxu0 %v3780_v33  ;;  %3055 = vmatprep.mubr.f32.mxu0 %v3767_v24  ;;  %v3461_v33 = vunpack.i.h.bf16 %v3459_v43 }
 0x2af   : > { %3272 = vmatprep.subr.bf16.mxu0 %v3252_v14 }
 0x2b0   : > { %v3867_v45 = vpack.c.bf16 %v3461_v33, %v3460_v44 }
 0x2b2   : > { %3274 = vmatpush3.bf16.msra.mxu0 %v3252_v14 }
 0x2b3   : > { %3276 = vmatprep.subr.bf16.mxu0 %v3782_v35 }
 0x2b6   : > { %3278 = vmatpush3.bf16.msra.mxu0 %v3782_v35  ;;  %v2751_v35 = vmul.f32 -1.442695, %v640_v26  ;;  %v3466_v26 = vunpack.i.h.bf16 %v3464_v17 }
 0x2b7   : > { %3280 = vmatprep.subr.bf16.mxu0 %v3260_v18 }
 0x2b8   : > { %3472 = vpow2.f32 %v2751_v35  ;;  %v3322_v32 = vpack.c.bf16 %v3466_v26, %v3465_v27  ;;  %v2784_v26 = vld [vmem:[%s3916_s25 + $0x8] sm:$0xf]  ;;  %v2789_v27 = vld [vmem:[%s3916_s25 + $0xc] sm:$0xf] }
 0x2ba   : > { %3282 = vmatpush3.bf16.msra.mxu0 %v3260_v18 }
 0x2bb   : > { %3284 = vmatprep.subr.bf16.mxu0 %v3805_v59 }
 0x2be   : > { %3286 = vmatpush3.bf16.msra.mxu0 %v3805_v59 }
 0x2bf   : > { %3288 = vmatprep.subr.bf16.mxu0 %v3287_v42 }
 0x2c2   : > { %3290 = vmatpush3.bf16.msra.mxu0 %v3287_v42  ;;  %v3473_v46 = vpop.eup %3472 }
 0x2c3   : > { %3292 = vmatprep.subr.bf16.mxu0 %v3808_v62  ;;  %v647_v47 = vadd.f32 1.0, %v3473_v46 }
 0x2c5   : > { %3474 = vrcp.f32 %v647_v47 }
 0x2c6   : > { %3294 = vmatpush3.bf16.msra.mxu0 %v3808_v62 }
 0x2c7   : > { %3296 = vmatprep.subr.bf16.mxu0 %v3867_v45 }
 0x2ca   : > { %3298 = vmatpush3.bf16.msra.mxu0 %v3867_v45 }
 0x2cb   : > { %3334 = vmatprep.subr.bf16.mxu0 %v3602_v53 }
 0x2cd   : > { %3056 = vmatmul.mubr.f32.vlgmr.msra.gmra.mrb[4].mxu0 %v3793_v52 }
 0x2ce   : > { %3104 = vmatprep.mubr.msk.f32.mxu0 %vm3603_vm0, %v3604_v54 }
 0x2cf   : > { %v3475_v51 = vpop.eup %3474 }
 0x2d0   : > { %v2752_v57 = vmul.f32 -1.442695, %v3475_v51 }
 0x380   : > { %v825_v48 = vpop.f32.mrb[2].mxu0 }
 0x381   : > { %v2758_v49 = vmul.f32 -1.442695, %v825_v48  ;;  %v3022_v50 = vpop.f32.mrb[3].mxu0 }
 0x383   : > { %3476 = vpow2.f32 %v2758_v49 }
 0x38d   : > { %v3477_v55 = vpop.eup %3476 }
 0x38e   : > { %v832_v56 = vadd.f32 1.0, %v3477_v55 }
 0x390   : > { %3478 = vrcp.f32 %v832_v56 }
 0x391   : > { %3480 = vpow2.f32 %v2752_v57 }
 0x39a   : > { %v3479_v53 = vpop.eup %3478 }
 0x39b   : > { %v2759_v58 = vmul.f32 -1.442695, %v3479_v53  ;;  %v3481_v60 = vpop.eup %3480 }
 0x39c   : > { %v653_v1 = vadd.f32 1.0, %v3481_v60 }
 0x39d   : > { %3482 = vpow2.f32 %v2759_v58 }
 0x39e   : > { %3484 = vrcp.f32 %v653_v1 }
 0x3a0   : > { %v3057_v61 = vpop.f32.mrb[4].mxu0 }
 0x3a1   : > { %v937_v2 = vadd.f32 %v3057_v61, %v3812_v63  ;;  %v931_v3 = vpop.f32.mrb[5].mxu0 }
 0x3a2   : > { %v932_v4 = vadd.f32 %v931_v3, %v3814_v0  ;;  %v3940_v3 = vld [vmem:[%s4129_s6] sm:$0xff] }
 0x3a3   : > { %v941_v5 = vmax.f32 %v937_v2, 0.0 }
 0x3a4   : > { %v940_v6 = vmax.f32 %v932_v4, 0.0 }
 0x3a5   : > { %v943_v7 = vmin.f32 %v941_v5, 6.0 }
 0x3a6   : > { %v942_v8 = vmin.f32 %v940_v6, 6.0 }
 0x3a7   : > { %v3483_v9 = vpop.eup %3482 }
 0x3a8   : > { %v838_v11 = vadd.f32 1.0, %v3483_v9  ;;  %v3300_v12 = vpack.c.bf16 %v943_v7, %v942_v8  ;;  %v3485_v13 = vpop.eup %3484 }
 0x3a9   : > { %v1212_v14 = vrot.slane %v3485_v13, 1  ;;  %v1243_v15 = vrot.slane %v3485_v13, 2 }
 0x3aa   : > { %3486 = vrcp.f32 %v838_v11  ;;  %3301 = vmatpush3.bf16.msra.mxu1 %v3300_v12 }
 0x3ab   : > { %3303 = vmatprep.subr.bf16.mxu1 %v3805_v59  ;;  %v1230_v25 = vsel %vm1229_vm2, %v3485_v13, %v1212_v14 }
 0x3ad   : > { %3063 = vmatmul.mubr.msk.f32.vlgmr.msra.gmra.mrb[4].mxu1 %vm570_vm1, %v3821_v10 }
 0x3ae   : > { %3305 = vmatpush3.bf16.msra.mxu1 %v3805_v59  ;;  %3097 = vmatprep.mubr.f32.mxu1 %v3767_v24  ;;  %v3318_v59 = vpack.c.bf16 %v3842_v20, %v3839_v19  ;;  %v1249_v24 = vsel %vm1229_vm2, %v1212_v14, %v1243_v15 }
 0x3af   : > { %3307 = vmatprep.subr.bf16.mxu1 %v3287_v42 }
 0x3b2   : > { %3309 = vmatpush3.bf16.msra.mxu1 %v3287_v42 }
 0x3b3   : > { %3311 = vmatprep.subr.bf16.mxu1 %v3808_v62 }
 0x3b4   : > { %v3487_v16 = vpop.eup %3486 }
 0x3b5   : > { %v1217_v18 = vrot.slane %v3487_v16, 7  ;;  %v1215_v22 = vrot.slane %v3487_v16, 6 }
 0x3b6   : > { %3313 = vmatpush3.bf16.msra.mxu1 %v3808_v62  ;;  %v3469_v62 = vpop.permute.xlu0 %3468 }
 0x3b7   : > { %3315 = vmatprep.subr.bf16.mxu1 %v3867_v45  ;;  %v1250_v28 = vsel %vm1231_vm3, %v1249_v24, %v1217_v18  ;;  %v1232_v29 = vsel %vm1231_vm3, %v1230_v25, %v1215_v22  ;;  %v3471_v19 = vunpack.i.h.bf16 %v3469_v62  ;;  %v3470_v20 = vunpack.i.l.bf16 %v3469_v62  ;;  %v2779_v25 = vld [vmem:[%s3916_s25 + $0x4] sm:$0xf] }
 0x3b8   : > { %v3889_v30 = vsel %vm1233_vm4, %v1250_v28, %v3487_v16  ;;  %v3891_v31 = vsel %vm1233_vm4, %v1232_v29, %v1217_v18  ;;  %v2794_v28 = vld [vmem:[%s3916_s25 + $0x10] sm:$0xf]  ;;  %v2799_v29 = vld [vmem:[%s3916_s25 + $0x14] sm:$0xf] }
 0x3b9   : > { %v3330_v36 = vpack.c.bf16 %v3471_v19, %v3470_v20 }
 0x3ba   : > { %3317 = vmatpush3.bf16.msra.mxu1 %v3867_v45 }
 0x3bb   : > { %3319 = vmatprep.subr.bf16.mxu1 %v3318_v59 }
 0x3be   : > { %3321 = vmatpush3.bf16.msra.mxu1 %v3318_v59 }
 0x3bf   : > { %3323 = vmatprep.subr.bf16.mxu1 %v3322_v32 }
 0x3c2   : > { %3325 = vmatpush3.bf16.msra.mxu1 %v3322_v32 }
 0x3c3   : > { %3327 = vmatprep.subr.bf16.mxu1 %v3326_v34 }
 0x3c6   : > { %3329 = vmatpush3.bf16.msra.mxu1 %v3326_v34 }
 0x3c7   : > { %3331 = vmatprep.subr.bf16.mxu1 %v3330_v36 }
 0x3ca   : > { %3333 = vmatpush3.bf16.msra.mxu1 %v3330_v36 }
 0x3cb   : > { %3117 = vmatprep.subr.mxu1 %v3604_v54 }
 0x3cd   : > { %3098 = vmatmul.mubr.f32.vlgmr.msra.gmra.mrb[6].mxu1 %v3793_v52  ;;  %v1403_v52 = vld [vmem:[%s3916_s25] sm:$0xf] }
 0x3ce   : > { %3119 = vmatprep.mubr.msk.f32.mxu1 %vm3603_vm0, %v3604_v54  ;;  %3118 = vmatpush3.msra.mxu1 %v3912_v23 }
 0x3cf   : > { %3122 = vmatprep.subr.mxu1 %v3604_v54 }
 0x3d1   : > { %3120 = vmatmul.mubr.msk.f32.vlgmr.msra.gmra.mrb[8].mxu1 %vm1256_vm5, %v1403_v52 }
 0x3d2   : > { %3124 = vmatprep.mubr.msk.f32.mxu1 %vm3603_vm0, %v3604_v54 }
 0x480   : > { %v1010_v38 = vpop.f32.mrb[4].mxu1 }
 0x481   : > { %v2765_v39 = vmul.f32 -1.442695, %v1010_v38  ;;  %v3064_v40 = vpop.f32.mrb[5].mxu1 }
 0x483   : > { %3488 = vpow2.f32 %v2765_v39 }
 0x48d   : > { %v3489_v41 = vpop.eup %3488 }
 0x48e   : > { %v1017_v42 = vadd.f32 1.0, %v3489_v41 }
 0x490   : > { %3490 = vrcp.f32 %v1017_v42 }
 0x49a   : > { %v3491_v43 = vpop.eup %3490 }
 0x49b   : > { %v2766_v33 = vmul.f32 -1.442695, %v3491_v43 }
 0x49d   : > { %3492 = vpow2.f32 %v2766_v33 }
 0x4a0   : > { %v3099_v44 = vpop.f32.mrb[6].mxu1 }
 0x4a1   : > { %v1122_v45 = vadd.f32 %v3099_v44, %v3812_v63  ;;  %v1116_v35 = vpop.f32.mrb[7].mxu1 }
 0x4a2   : > { %v1117_v46 = vadd.f32 %v1116_v35, %v3814_v0 }
 0x4a3   : > { %v1126_v47 = vmax.f32 %v1122_v45, 0.0 }
 0x4a4   : > { %v1125_v48 = vmax.f32 %v1117_v46, 0.0  ;;  %v1473_v1 = vpop.f32.mrb[8].mxu1 }
 0x4a5   : > { %v1128_v49 = vmin.f32 %v1126_v47, 6.0  ;;  %3123 = vmatpush3.msk.msra.mxu1 %vm1235_vm6, %v1473_v1  ;;  %v3121_v2 = vpop.f32.mrb[9].mxu1 }
 0x4a6   : > { %v1127_v50 = vmin.f32 %v1125_v48, 6.0  ;;  %3132 = vmatprep.subr.mxu1 %v3604_v54  ;;  %3125 = vmatmul.mubr.msk.f32.vlgmr.msra.gmra.mrb[10].mxu1 %vm1477_vm8, %v3940_v3 }
 0x4a7   : > { %v3493_v51 = vpop.eup %3492  ;;  %3134 = vmatprep.mubr.msk.f32.mxu1 %vm3603_vm0, %v3604_v54 }
 0x4a8   : > { %v1023_v55 = vadd.f32 1.0, %v3493_v51  ;;  %v3335_v56 = vpack.c.bf16 %v1128_v49, %v1127_v50 }
 0x4aa   : > { %3494 = vrcp.f32 %v1023_v55  ;;  %3336 = vmatpush3.bf16.msra.mxu0 %v3335_v56 }
 0x4ab   : > { %3107 = vmatprep.subr.mxu0 %v3604_v54 }
 0x4ad   : > { %3105 = vmatmul.mubr.msk.f32.vlgmr.msra.gmra.mrb[6].mxu0 %vm570_vm1, %v3821_v10 }
 0x4ae   : > { %3108 = vmatpush3.msra.mxu0 %v431_v21  ;;  %3109 = vmatprep.mubr.msk.f32.mxu0 %vm3603_vm0, %v3604_v54 }
 0x4af   : > { %3112 = vmatprep.subr.mxu0 %v3604_v54 }
 0x4b4   : > { %v3495_v63 = vpop.eup %3494 }
 0x4b5   : > { %v1222_v0 = vrot.slane %v3495_v63, 5  ;;  %v1245_v57 = vrot.slane %v3495_v63, 6  ;;  %v1220_v53 = vrot.slane %v3495_v63, 4 }
 0x4b7   : > { %v1252_v58 = vsel %vm1235_vm6, %v3889_v30, %v1222_v0  ;;  %v1236_v60 = vsel %vm1235_vm6, %v3891_v31, %v1220_v53  ;;  %v2804_v30 = vld [vmem:[%s3916_s25 + $0x18] sm:$0xf]  ;;  %v2809_v31 = vld [vmem:[%s3916_s25 + $0x1c] sm:$0xf]  ;;  %s2614_s25 = scalar_lea.sflag [#allocation4], %s3909_s18 }
 0x4b8   : > { %v1253_v61 = vsel %vm1237_vm7, %v1252_v58, %v1245_v57  ;;  %v1238_v10 = vsel %vm1237_vm7, %v1236_v60, %v1222_v0 }
 0x579   : > { %v1550_v32 = vpop.f32.mrb[10].mxu1 }
 0x57a   : > { %v3126_v62 = vpop.f32.mrb[11].mxu1 }
 0x580   : > { %v1195_v4 = vpop.f32.mrb[6].mxu0 }
 0x581   : > { %v2772_v5 = vmul.f32 -1.442695, %v1195_v4  ;;  %v3106_v6 = vpop.f32.mrb[7].mxu0 }
 0x583   : > { %3496 = vpow2.f32 %v2772_v5 }
 0x58d   : > { %v3497_v7 = vpop.eup %3496 }
 0x58e   : > { %v1202_v8 = vadd.f32 1.0, %v3497_v7 }
 0x590   : > { %3498 = vrcp.f32 %v1202_v8 }
 0x59a   : > { %v3499_v9 = vpop.eup %3498 }
 0x59b   : > { %v2773_v11 = vmul.f32 -1.442695, %v3499_v9 }
 0x59d   : > { %3500 = vpow2.f32 %v2773_v11 }
 0x5a7   : > { %v3501_v12 = vpop.eup %3500 }
 0x5a8   : > { %v1208_v13 = vadd.f32 1.0, %v3501_v12 }
 0x5aa   : > { %3502 = vrcp.f32 %v1208_v13 }
 0x5b4   : > { %v3503_v14 = vpop.eup %3502 }
 0x5b5   : > { %v1227_v15 = vrot.slane %v3503_v14, 3  ;;  %v1247_v16 = vrot.slane %v3503_v14, 4  ;;  %v1225_v17 = vrot.slane %v3503_v14, 2 }
 0x5b7   : > { %v1254_v18 = vsel %vm1239_vm9, %v1253_v61, %v1227_v15  ;;  %v1240_v22 = vsel %vm1239_vm9, %v1238_v10, %v1225_v17 }
 0x5b8   : > { %v1255_v59 = vsel %vm1241_vm10, %v1254_v18, %v1247_v16  ;;  %v1242_v24 = vsel %vm1241_vm10, %v1240_v22, %v1227_v15 }
 0x5b9   : > { %3110 = vmatmul.mubr.msk.f32.vlgmr.msra.gmra.mrb[8].mxu0 %vm1256_vm5, %v1255_v59 }
 0x5ba   : > { %3113 = vmatpush3.msra.mxu0 %v3903_v37  ;;  %3114 = vmatprep.mubr.msk.f32.mxu0 %vm3603_vm0, %v3604_v54 }
 0x5bb   : > { %3127 = vmatprep.subr.mxu0 %v3604_v54 }
 0x5c1   : > { %3115 = vmatmul.mubr.msk.f32.vlgmr.msra.gmra.mrb[8].mxu0 %vm1256_vm5, %v1242_v24 }
 0x5c2   : > { %3128 = vmatpush3.msra.mxu0 %v3912_v23  ;;  %3129 = vmatprep.mubr.msk.f32.mxu0 %vm3603_vm0, %v3604_v54 }
 0x5c3   : > { %3137 = vmatprep.subr.mxu0 %v3604_v54 }
 0x5c5   : > { %3130 = vmatmul.mubr.msk.f32.vlgmr.msra.gmra.mrb[10].mxu0 %vm1256_vm5, %v2779_v25 }
 0x5c6   : > { %3138 = vmatpush3.msra.mxu0 %v3912_v23  ;;  %3139 = vmatprep.mubr.msk.f32.mxu0 %vm3603_vm0, %v3604_v54 }
 0x5c7   : > { %3147 = vmatprep.subr.mxu0 %v3604_v54 }
 0x5c9   : > { %3140 = vmatmul.mubr.msk.f32.vlgmr.msra.gmra.mrb[12].mxu0 %vm1256_vm5, %v2784_v26 }
 0x5ca   : > { %3148 = vmatpush3.msra.mxu0 %v3912_v23  ;;  %3149 = vmatprep.mubr.msk.f32.mxu0 %vm3603_vm0, %v3604_v54 }
 0x5cb   : > { %3157 = vmatprep.subr.mxu0 %v3604_v54 }
 0x5cd   : > { %3150 = vmatmul.mubr.msk.f32.vlgmr.msra.gmra.mrb[14].mxu0 %vm1256_vm5, %v2789_v27 }
 0x5ce   : > { %3158 = vmatpush3.msra.mxu0 %v3912_v23  ;;  %3159 = vmatprep.mubr.msk.f32.mxu0 %vm3603_vm0, %v3604_v54 }
 0x5cf   : > { %3167 = vmatprep.subr.mxu0 %v3604_v54 }
 0x5d1   : > { %3160 = vmatmul.mubr.msk.f32.vlgmr.msra.gmra.mrb[16].mxu0 %vm1256_vm5, %v2794_v28 }
 0x5d2   : > { %3168 = vmatpush3.msra.mxu0 %v3912_v23  ;;  %3169 = vmatprep.mubr.msk.f32.mxu0 %vm3603_vm0, %v3604_v54 }
 0x5d3   : > { %3177 = vmatprep.subr.mxu0 %v3604_v54 }
 0x5d5   : > { %3170 = vmatmul.mubr.msk.f32.vlgmr.msra.gmra.mrb[18].mxu0 %vm1256_vm5, %v2799_v29 }
 0x5d6   : > { %3178 = vmatpush3.msra.mxu0 %v3912_v23  ;;  %3179 = vmatprep.mubr.msk.f32.mxu0 %vm3603_vm0, %v3604_v54 }
 0x5d7   : > { %3187 = vmatprep.subr.mxu0 %v3604_v54 }
 0x5d9   : > { %3180 = vmatmul.mubr.msk.f32.vlgmr.msra.gmra.mrb[20].mxu0 %vm1256_vm5, %v2804_v30 }
 0x5da   : > { %3188 = vmatpush3.msra.mxu0 %v3912_v23  ;;  %3189 = vmatprep.mubr.msk.f32.mxu0 %vm3603_vm0, %v3604_v54 }
 0x5dd   : > { %3190 = vmatmul.mubr.msk.f32.vlgmr.msra.gmra.mrb[22].mxu0 %vm1256_vm5, %v2809_v31 }
 0x694   : > { %v3994_v19 = vpop.f32.mrb[8].mxu0 }
 0x695   : > { %v1554_v20 = vmul.f32 %v1550_v32, %v3994_v19  ;;  %v3116_v34 = vpop.f32.mrb[9].mxu0 }
 0x697   : > { %1555 = vst.msk [vmem:[%s3997_s22] sm:$0xff] %vm570_vm1, %v1554_v20 }
 0x698   : > { %v1627_v36 = vpop.f32.mrb[10].mxu0 }
 0x699   : > { %v3131_v37 = vpop.f32.mrb[11].mxu0  ;;  %3133 = vmatpush3.msk.msra.mxu1 %vm1235_vm6, %v1627_v36 }
 0x69a   : > { %3135 = vmatmul.mubr.msk.f32.vlgmr.msra.gmra.mrb[12].mxu1 %vm1477_vm8, %v3940_v3  ;;  %3142 = vmatprep.subr.mxu1 %v3604_v54 }
 0x69b   : > { %3144 = vmatprep.mubr.msk.f32.mxu1 %vm3603_vm0, %v3604_v54 }
 0x69c   : > { %v1778_v21 = vpop.f32.mrb[12].mxu0 }
 0x69d   : > { %v3141_v23 = vpop.f32.mrb[13].mxu0  ;;  %3143 = vmatpush3.msk.msra.mxu1 %vm1235_vm6, %v1778_v21 }
 0x69e   : > { %3145 = vmatmul.mubr.msk.f32.vlgmr.msra.gmra.mrb[14].mxu1 %vm1477_vm8, %v3940_v3  ;;  %3152 = vmatprep.subr.mxu1 %v3604_v54 }
 0x69f   : > { %3154 = vmatprep.mubr.msk.f32.mxu1 %vm3603_vm0, %v3604_v54 }
 0x6a0   : > { %v1929_v52 = vpop.f32.mrb[14].mxu0 }
 0x6a1   : > { %v3151_v38 = vpop.f32.mrb[15].mxu0  ;;  %3153 = vmatpush3.msk.msra.mxu1 %vm1235_vm6, %v1929_v52 }
 0x6a2   : > { %3155 = vmatmul.mubr.msk.f32.vlgmr.msra.gmra.mrb[16].mxu1 %vm1477_vm8, %v3940_v3  ;;  %3162 = vmatprep.subr.mxu1 %v3604_v54 }
 0x6a3   : > { %3164 = vmatprep.mubr.msk.f32.mxu1 %vm3603_vm0, %v3604_v54 }
 0x6a4   : > { %v2080_v39 = vpop.f32.mrb[16].mxu0 }
 0x6a5   : > { %v3161_v40 = vpop.f32.mrb[17].mxu0  ;;  %3163 = vmatpush3.msk.msra.mxu1 %vm1235_vm6, %v2080_v39 }
 0x6a6   : > { %3165 = vmatmul.mubr.msk.f32.vlgmr.msra.gmra.mrb[18].mxu1 %vm1477_vm8, %v3940_v3  ;;  %3172 = vmatprep.subr.mxu1 %v3604_v54 }
 0x6a7   : > { %3174 = vmatprep.mubr.msk.f32.mxu1 %vm3603_vm0, %v3604_v54 }
 0x6a8   : > { %v2231_v41 = vpop.f32.mrb[18].mxu0 }
 0x6a9   : > { %v3171_v42 = vpop.f32.mrb[19].mxu0  ;;  %3173 = vmatpush3.msk.msra.mxu1 %vm1235_vm6, %v2231_v41 }
 0x6aa   : > { %3175 = vmatmul.mubr.msk.f32.vlgmr.msra.gmra.mrb[20].mxu1 %vm1477_vm8, %v3940_v3  ;;  %3182 = vmatprep.subr.mxu1 %v3604_v54 }
 0x6ab   : > { %3184 = vmatprep.mubr.msk.f32.mxu1 %vm3603_vm0, %v3604_v54 }
 0x6ac   : > { %v2382_v43 = vpop.f32.mrb[20].mxu0 }
 0x6ad   : > { %v3181_v33 = vpop.f32.mrb[21].mxu0  ;;  %3183 = vmatpush3.msk.msra.mxu1 %vm1235_vm6, %v2382_v43 }
 0x6ae   : > { %3185 = vmatmul.mubr.msk.f32.vlgmr.msra.gmra.mrb[22].mxu1 %vm1477_vm8, %v3940_v3  ;;  %3192 = vmatprep.subr.mxu1 %v3604_v54 }
 0x6af   : > { %3194 = vmatprep.mubr.msk.f32.mxu1 %vm3603_vm0, %v3604_v54 }
 0x6b0   : > { %v2533_v44 = vpop.f32.mrb[22].mxu0 }
 0x6b1   : > { %v3191_v45 = vpop.f32.mrb[23].mxu0  ;;  %3193 = vmatpush3.msk.msra.mxu1 %vm1235_vm6, %v2533_v44 }
 0x6b2   : > { %3195 = vmatmul.mubr.msk.f32.vlgmr.msra.gmra.mrb[24].mxu1 %vm1477_vm8, %v3940_v3 }
 0x76d   : > { %v1700_v35 = vpop.f32.mrb[12].mxu1 }
 0x76e   : > { %v1704_v46 = vmul.f32 %v1700_v35, %v3994_v19  ;;  %v3136_v47 = vpop.f32.mrb[13].mxu1 }
 0x770   : > { %2783 = vst.msk [vmem:[%s3997_s22 + $0x8] sm:$0xff] %vm570_vm1, %v1704_v46 }
 0x771   : > { %v1851_v48 = vpop.f32.mrb[14].mxu1 }
 0x772   : > { %v1855_v54 = vmul.f32 %v1851_v48, %v3994_v19  ;;  %v3146_v49 = vpop.f32.mrb[15].mxu1 }
 0x774   : > { %2788 = vst.msk [vmem:[%s3997_s22 + $0x10] sm:$0xff] %vm570_vm1, %v1855_v54 }
 0x775   : > { %v2002_v50 = vpop.f32.mrb[16].mxu1 }
 0x776   : > { %v2006_v51 = vmul.f32 %v2002_v50, %v3994_v19  ;;  %v3156_v55 = vpop.f32.mrb[17].mxu1 }
 0x778   : > { %2793 = vst.msk [vmem:[%s3997_s22 + $0x18] sm:$0xff] %vm570_vm1, %v2006_v51 }
 0x779   : > { %v2153_v56 = vpop.f32.mrb[18].mxu1 }
 0x77a   : > { %v2157_v63 = vmul.f32 %v2153_v56, %v3994_v19  ;;  %v3166_v0 = vpop.f32.mrb[19].mxu1 }
 0x77c   : > { %2798 = vst.msk [vmem:[%s3997_s22 + $0x20] sm:$0xff] %vm570_vm1, %v2157_v63 }
 0x77d   : > { %v2304_v57 = vpop.f32.mrb[20].mxu1 }
 0x77e   : > { %v2308_v53 = vmul.f32 %v2304_v57, %v3994_v19  ;;  %v3176_v58 = vpop.f32.mrb[21].mxu1 }
 0x780   : > { %2803 = vst.msk [vmem:[%s3997_s22 + $0x28] sm:$0xff] %vm570_vm1, %v2308_v53 }
 0x781   : > { %v2455_v60 = vpop.f32.mrb[22].mxu1 }
 0x782   : > { %v2459_v61 = vmul.f32 %v2455_v60, %v3994_v19  ;;  %v3186_v10 = vpop.f32.mrb[23].mxu1 }
 0x784   : > { %2808 = vst.msk [vmem:[%s3997_s22 + $0x30] sm:$0xff] %vm570_vm1, %v2459_v61 }
 0x785   : > { %v2606_v1 = vpop.f32.mrb[24].mxu1 }
 0x786   : > { %v2610_v2 = vmul.f32 %v2606_v1, %v3994_v19  ;;  %v3196_v3 = vpop.f32.mrb[25].mxu1 }
 0x788   : > { %2813 = vst.msk [vmem:[%s3997_s22 + $0x38] sm:$0xff] %vm570_vm1, %v2610_v2 }
 0x789   : > { %3517 = shalt.err (!%p3514_p11)
}
 0x78a   : > { %s3518_s22 = scalar_lea.hbm %s4066_s30, 1024  ;;  %s3522_s9 = scalar_lea.hbm %s4131_s8, 4096 }
 0x78b   : > { %p3519_p12 = scmp.ne.s32.totalorder %s4066_s30, %s3518_s22  ;;  %p3523_p1 = scmp.lt.u32.totalorder %s4066_s30, %s4131_s8 }
 0x78c   : > { %p3524_p2 = scmp.lt.u32.totalorder %s3522_s9, %s3518_s22  ;;  %p3526_p4 = scmp.lt.u32.totalorder %s3518_s22, %s4066_s30 }
 0x78d   : > { %p3520_p13 = pnand %p3519_p12, %p3714_p8 }
 0x78e   : > { %p3525_p3 = por %p3524_p2, %p3523_p1 }
 0x78f   : > { %p3521_p0 = pneg %p3520_p13 }
 0x790   : > { %p3527_p5 = por %p3526_p4, %p3525_p3 }
 0x792   : > { %p3528_p6 = pnand %p3527_p5, %p3521_p0 }
 0x794   : > { %3531 = shalt.err (!%p3528_p6)
}
 0x795   : > { %s3606_s26 = smov 128   ;;  %s3607_s14 = smov 256  }
 0x796   : > { %s3608_s17 = smov 8  }
 0x797   : > { %3341 = dma.vmem_to_hbm [thread:$0]  (%p3714_p8), %s4059_s15, 1024, %s4066_s30, %s2614_s25, %s3606_s26, %s3607_s14, %s3608_s17  }
 0x798 PF: > { %p3347_p7 = scmp.ge.s32.totalorder %s3598_s12, 2  ;;  %s2643_s21 = sand.u32 1, %s3570_s27  }
 0x799   : > { %s2644_s22 = scalar_lea.sflag [#allocation4], %s2643_s21 }
 0x79a   : > { %p3344_p10 = pnand %p3347_p7, %p3718_p9 }
 0x79c   : > { %3565 = dma.done.wait (!%p3344_p10), %s2644_s22, 1024  }
 0x79d   : > { %3567 = vsyncadd (!%p3344_p10), %s2644_s22, 4294966272  ;;  %s21_s12 = sadd.s32 1, %s3598_s12   ;;  %s4139_s19 = sld [smem:[#allocation6_spill]] }
 0x79e   : > { %p18_p11 = scmp.ge.s32.totalorder %s21_s12, 6   ;;  %s4140_s18 = sld [smem:[#allocation7_spill]] }
 0x79f   : > { %s4141_s27 = smov %s3574_s28  ;;  %s4142_s28 = smov %s3578_s29 }
 0x7a0   : > { %s4143_s29 = smov %s3726_s24  ;;  %s4144_s30 = smov %s3590_s10 }
 0x7a1   : > { %s4145_s9 = smov %s3594_s11  ;;  %20 = sbr.rel (!%p18_p11) target bundleno = 5 (0x5), region = 169 }
 0x7a3   : > { %s4146_s10 = smov %s4139_s19 }
 0x7a4   : > { %s4147_s11 = smov %s4140_s18 }
 0x7a8   :  { %2649 = vsyncpa [#allocation4], 1 }
 0x7a9   :  { %2651 = vsyncpa [#allocation4 + $0x1], 1 }

</bundles_post_ra>
